<compile_context>
chip_gen: v5e
topology: v5e:2x2
jax: 0.10.0
libtpu: 0.0.40
codegen_flags: <defaults>
</compile_context>

<pallas_src>
import math
import functools

import jax
import jax.numpy as jnp
from jax.experimental import pallas as pl
from jax.experimental.pallas import tpu as pltpu


# -----------------------------------------------------------------------------
# Single fused Pallas kernel
# -----------------------------------------------------------------------------
def fused_transformer_kernel(
    patches_ref,     # (B*S, Pd)
    emb_bias_ref,    # (B*S, D)     patch-embedding bias + positional encoding
    attn_bias_ref,   # (H*B*S, B*S) block-diagonal batch mask, tiled over heads
    head_mask_ref,   # (H*B*S, D)   head-h lane mask on stacked row-block h
    pool_ref,        # (B, B*S)     1/S on same-batch columns, else 0
    we_ref,          # (Pd, D)      patch embedding
    wqkv_ref,        # (L, D, 3D)   [Wq * 1/sqrt(dk) | Wk | Wv]
    wo_ref,          # (L, D, D)
    w1_ref,          # (L, D, F)
    w2_ref,          # (L, F, D)
    ln_ref,          # (L, 4, D)    [g1, b1, g2, b2]
    fin_ref,         # (3, D)       [gamma_final, beta_final, fc-bias (padded)]
    wf_ref,          # (D, C)
    o_ref,           # out: (B, C)
    *, num_heads, num_layers):
  f32 = jnp.float32

  # ---- patch embedding + (bias + positional encoding, folded on host) ------
  x = jnp.dot(patches_ref[...], we_ref[...], preferred_element_type=f32)
  x = x + emb_bias_ref[...]                                   # (B*S, D)

  BS, D = x.shape
  attn_bias = attn_bias_ref[...]                              # (H*BS, BS)
  head_mask = head_mask_ref[...]                              # (H*BS, D)

  def layer_norm(z, g, b):
    mu = jnp.mean(z, axis=-1, keepdims=True)
    var = jnp.mean(z * z, axis=-1, keepdims=True) - mu * mu   # E[x^2] - mu^2
    return (z - mu) * jax.lax.rsqrt(var + 1e-5) * g + b

  # ---- encoder layers (static unrolled, activations stay resident) ---------
  for l in range(num_layers):
    # Fused QKV projection: one 96-output-lane matmul instead of three 32-lane.
    qkv = jnp.dot(x, wqkv_ref[l], preferred_element_type=f32)  # (BS, 3D)
    q = qkv[:, 0:D]                 # already scaled by 1/sqrt(dk) via the weight
    k = qkv[:, D:2 * D]
    v = qkv[:, 2 * D:3 * D]

    # Head-stacked attention: all heads in ONE score matmul, ONE softmax and
    # ONE context matmul over a full (H*BS, *) = (128, *) sublane tile.
    # (q tiled over head row-blocks, masked to that head's dk lanes).
    q_st = jnp.concatenate([q] * num_heads, axis=0) * head_mask   # (H*BS, D)
    s = jax.lax.dot_general(q_st, k, (((1,), (1,)), ((), ())),
                            preferred_element_type=f32)           # (H*BS, BS)
    s = s + attn_bias                              # block-diag over batch
    s = s - jnp.max(s, axis=-1, keepdims=True)     # stable softmax
    e = jnp.exp(s)
    p = e * pl.reciprocal(jnp.sum(e, axis=-1, keepdims=True), approx=True)
    # P_stacked @ V, then mask each head's row-block to its own dk columns;
    # summing the head blocks reproduces the concatenated (BS, D) layout.
    c = jnp.dot(p, v, preferred_element_type=f32) * head_mask     # (H*BS, D)
    attn = c[0:BS]
    for h in range(1, num_heads):
      attn = attn + c[h * BS:(h + 1) * BS]
    attn = jnp.dot(attn, wo_ref[l], preferred_element_type=f32)

    ln_l = ln_ref[l]                                              # (4, D)
    x1 = layer_norm(x + attn, ln_l[0:1, :], ln_l[1:2, :])
    hid = jnp.maximum(jnp.dot(x1, w1_ref[l], preferred_element_type=f32), 0.0)
    ff = jnp.dot(hid, w2_ref[l], preferred_element_type=f32)
    x = layer_norm(x1 + ff, ln_l[2:3, :], ln_l[3:4, :])

  # ---- final norm, mean over patches (as a matmul), classifier -------------
  fin = fin_ref[...]                                              # (3, D)
  xn = layer_norm(x, fin[0:1, :], fin[1:2, :])                    # (BS, D)
  pooled = jnp.dot(pool_ref[...], xn, preferred_element_type=f32)  # (B, D)
  C = wf_ref.shape[-1]
  logits = (jnp.dot(pooled, wf_ref[...], preferred_element_type=f32)
            + fin[2:3, 0:C])
  o_ref[...] = logits.astype(o_ref.dtype)


# -----------------------------------------------------------------------------
# Wrapper: one gridless pallas_call, everything whole-array in VMEM
# -----------------------------------------------------------------------------
def fused_pallas_forward(patches2d, emb_bias, attn_bias_st, head_mask_st,
                         pool_mat, we, wqkv, wo, w1, w2, ln, fin, wf,
                         *, num_heads, num_layers):
  BS, Pd = patches2d.shape
  D = we.shape[1]
  F = w1.shape[-1]
  C = wf.shape[-1]
  B = pool_mat.shape[0]
  H, L = num_heads, num_layers

  args = (patches2d, emb_bias, attn_bias_st, head_mask_st, pool_mat,
          we, wqkv, wo, w1, w2, ln, fin, wf)

  # Advisory cost estimate so XLA can schedule around this tiny custom call.
  flops_embed = 2 * BS * Pd * D
  flops_layer = (2 * BS * D * (3 * D)            # fused QKV projection
                 + 2 * (H * BS) * BS * D         # head-stacked scores
                 + 2 * (H * BS) * BS * D         # head-stacked context
                 + 2 * BS * D * D                # W_o
                 + 2 * 2 * BS * D * F)           # FFN
  flops_head = 2 * B * BS * D + 2 * B * D * C
  flops = int(flops_embed + L * flops_layer + flops_head)
  transcendentals = int(L * (H * BS * BS + H * BS) + (2 * L + 1) * BS)
  bytes_accessed = int(sum(a.size * a.dtype.itemsize for a in args)
                       + B * C * 4)

  vmem_spec = pl.BlockSpec(memory_space=pltpu.MemorySpace.VMEM)
  kern = functools.partial(fused_transformer_kernel,
                           num_heads=num_heads, num_layers=num_layers)
  return pl.pallas_call(
      kern,
      out_shape=jax.ShapeDtypeStruct((B, C), jnp.float32),
      in_specs=[vmem_spec] * len(args),
      out_specs=vmem_spec,
      cost_estimate=pl.CostEstimate(flops=flops,
                                    transcendentals=transcendentals,
                                    bytes_accessed=bytes_accessed),
  )(*args)


# -----------------------------------------------------------------------------
# Pure-JAX glue: patchify, positional encoding, constant masks, params, packing
# -----------------------------------------------------------------------------
def patchify(images, patch_size):
  # Reproduces torch: unfold(2,p,p).unfold(3,p,p).contiguous().view(B,-1,3*p*p)
  B, C, H, W = images.shape
  p = patch_size
  xr = images.reshape(B, C, H // p, p, W // p, p)
  xr = xr.transpose(0, 1, 2, 4, 3, 5)                 # (B, C, H/p, W/p, p, p)
  return xr.reshape(B, -1, C * p * p)


def positional_encoding(max_len, d_model):
  position = jnp.arange(max_len, dtype=jnp.float32)[:, None]
  div_term = jnp.exp(jnp.arange(0, d_model, 2, dtype=jnp.float32)
                     * -(math.log(10000.0) / d_model))
  pe = jnp.zeros((max_len, d_model), jnp.float32)
  pe = pe.at[:, 0::2].set(jnp.sin(position * div_term))
  pe = pe.at[:, 1::2].set(jnp.cos(position * div_term))
  return pe


def build_constants(batch, seq, d_model, num_heads):
  BS = batch * seq
  d_k = d_model // num_heads
  row_b = jnp.arange(BS, dtype=jnp.int32)[:, None] // seq
  col_b = jnp.arange(BS, dtype=jnp.int32)[None, :] // seq
  attn_bias = jnp.where(row_b == col_b, 0.0, -1e30).astype(jnp.float32)
  attn_bias_st = jnp.tile(attn_bias, (num_heads, 1))               # (H*BS, BS)
  lane_head = jnp.arange(d_model, dtype=jnp.int32) // d_k          # (D,)
  row_head = jnp.arange(num_heads * BS, dtype=jnp.int32) // BS     # (H*BS,)
  head_mask_st = (lane_head[None, :] ==
                  row_head[:, None]).astype(jnp.float32)           # (H*BS, D)
  pool_mat = (jnp.arange(BS, dtype=jnp.int32)[None, :] // seq ==
              jnp.arange(batch, dtype=jnp.int32)[:, None]
              ).astype(jnp.float32) / float(seq)                   # (B, BS)
  return attn_bias_st, head_mask_st, pool_mat


def init_params(key, patch_dim, d_model, num_heads, num_layers, d_ff,
                num_classes):
  def linear_w(k, fan_in, fan_out, *lead):
    return (jax.random.normal(k, (*lead, fan_in, fan_out), jnp.float32)
            / math.sqrt(fan_in))

  ks = jax.random.split(key, 10)
  return {
      "We": linear_w(ks[0], patch_dim, d_model),
      "be": 0.01 * jax.random.normal(ks[1], (1, d_model), jnp.float32),
      "Wq": linear_w(ks[2], d_model, d_model, num_layers),
      "Wk": linear_w(ks[3], d_model, d_model, num_layers),
      "Wv": linear_w(ks[4], d_model, d_model, num_layers),
      "Wo": linear_w(ks[5], d_model, d_model, num_layers),
      "W1": linear_w(ks[6], d_model, d_ff, num_layers),
      "W2": linear_w(ks[7], d_ff, d_model, num_layers),
      "G1": jnp.ones((num_layers, 1, d_model), jnp.float32),
      "B1": jnp.zeros((num_layers, 1, d_model), jnp.float32),
      "G2": jnp.ones((num_layers, 1, d_model), jnp.float32),
      "B2": jnp.zeros((num_layers, 1, d_model), jnp.float32),
      "Gf": jnp.ones((1, d_model), jnp.float32),
      "Bnf": jnp.zeros((1, d_model), jnp.float32),
      "Wf": linear_w(ks[8], d_model, num_classes),
      "bf": 0.01 * jax.random.normal(ks[9], (1, num_classes), jnp.float32),
  }


def transformer_encoder_forward(x, params, pe, *, patch_size, num_heads,
                                num_layers):
  B = x.shape[0]
  patches = patchify(x, patch_size)                    # (B, S, Pd)
  _, S, Pd = patches.shape
  D = params["We"].shape[1]
  d_k = D // num_heads
  C = params["Wf"].shape[-1]

  patches2d = patches.reshape(B * S, Pd)               # batch folded into sublanes
  emb_bias = jnp.tile(pe, (B, 1)) + params["be"]       # (B*S, D): pe + bias
  attn_bias_st, head_mask_st, pool_mat = build_constants(B, S, D, num_heads)

  # ---- host-side weight packing: fewer, denser VMEM inputs ----------------
  wqkv = jnp.concatenate(
      [params["Wq"] * (1.0 / math.sqrt(d_k)),          # fold 1/sqrt(dk) into Wq
       params["Wk"], params["Wv"]], axis=-1)           # (L, D, 3D)
  ln = jnp.concatenate([params["G1"], params["B1"],
                        params["G2"], params["B2"]], axis=1)      # (L, 4, D)
  bf_pad = jnp.zeros((1, D), jnp.float32).at[:, :C].set(params["bf"])
  fin = jnp.concatenate([params["Gf"], params["Bnf"], bf_pad], axis=0)  # (3, D)

  return fused_pallas_forward(
      patches2d, emb_bias, attn_bias_st, head_mask_st, pool_mat,
      params["We"], wqkv, params["Wo"], params["W1"], params["W2"], ln, fin,
      params["Wf"], num_heads=num_heads, num_layers=num_layers)


# -----------------------------------------------------------------------------
# Pure-JAX reference (standard multi-head formulation) for a sanity check
# -----------------------------------------------------------------------------
def reference_forward(x, params, pe, *, patch_size, num_heads, num_layers):
  hi = jax.lax.Precision.HIGHEST
  patches = patchify(x, patch_size)
  h = jnp.einsum("bsp,pd->bsd", patches, params["We"], precision=hi)
  h = h + params["be"] + pe
  B, S, D = h.shape
  d_k = D // num_heads

  def ln(z, g, b):
    mu = jnp.mean(z, axis=-1, keepdims=True)
    var = jnp.mean((z - mu) ** 2, axis=-1, keepdims=True)
    return (z - mu) / jnp.sqrt(var + 1e-5) * g + b

  for l in range(num_layers):
    q = jnp.einsum("bsd,de->bse", h, params["Wq"][l], precision=hi)
    k = jnp.einsum("bsd,de->bse", h, params["Wk"][l], precision=hi)
    v = jnp.einsum("bsd,de->bse", h, params["Wv"][l], precision=hi)
    qh = q.reshape(B, S, num_heads, d_k).transpose(0, 2, 1, 3)
    kh = k.reshape(B, S, num_heads, d_k).transpose(0, 2, 1, 3)
    vh = v.reshape(B, S, num_heads, d_k).transpose(0, 2, 1, 3)
    s = jnp.einsum("bhqd,bhkd->bhqk", qh, kh, precision=hi) / math.sqrt(d_k)
    p = jax.nn.softmax(s, axis=-1)
    ctx = jnp.einsum("bhqk,bhkd->bhqd", p, vh, precision=hi)
    ctx = ctx.transpose(0, 2, 1, 3).reshape(B, S, D)
    attn = jnp.einsum("bsd,de->bse", ctx, params["Wo"][l], precision=hi)
    h1 = ln(h + attn, params["G1"][l], params["B1"][l])
    ff = jnp.maximum(
        jnp.einsum("bsd,df->bsf", h1, params["W1"][l], precision=hi), 0.0)
    ff = jnp.einsum("bsf,fd->bsd", ff, params["W2"][l], precision=hi)
    h = ln(h1 + ff, params["G2"][l], params["B2"][l])
  h = ln(h, params["Gf"], params["Bnf"])
  pooled = h.mean(axis=1)
  return jnp.einsum("bd,dc->bc", pooled, params["Wf"], precision=hi) + params["bf"]


# -----------------------------------------------------------------------------
if __name__ == "__main__":
  img_size, patch_size = 16, 4
  d_model, num_heads, num_layers, d_ff, num_classes = 32, 4, 2, 64, 10
  batch = 2

  num_patches = (img_size // patch_size) ** 2          # 16
  patch_dim = 3 * patch_size * patch_size              # 48

  key = jax.random.PRNGKey(0)
  k_x, k_p = jax.random.split(key)
  x = jax.random.normal(k_x, (batch, 3, img_size, img_size), jnp.float32)

  params = init_params(k_p, patch_dim, d_model, num_heads, num_layers, d_ff,
                       num_classes)
  pe = positional_encoding(num_patches, d_model)

  fwd = jax.jit(functools.partial(transformer_encoder_forward,
                                  patch_size=patch_size,
                                  num_heads=num_heads,
                                  num_layers=num_layers))
  out = jax.block_until_ready(fwd(x, params, pe))
  assert out.shape == (batch, num_classes)

  ref = jax.block_until_ready(
      reference_forward(x, params, pe, patch_size=patch_size,
                        num_heads=num_heads, num_layers=num_layers))
  max_err = float(jnp.max(jnp.abs(out - ref)))
  assert max_err < 5e-2, f"kernel vs reference max|diff|={max_err}"
  print("KERNEL_OK")
</pallas_src>

<mosaic_0001>
module attributes {stable_mosaic.version = 11 : i64} {
  func.func @fused_transformer_kernel(%arg0: memref<32x48xf32, #tpu.memory_space<vmem>>, %arg1: memref<32x32xf32, #tpu.memory_space<vmem>>, %arg2: memref<128x32xf32, #tpu.memory_space<vmem>>, %arg3: memref<128x32xf32, #tpu.memory_space<vmem>>, %arg4: memref<2x32xf32, #tpu.memory_space<vmem>>, %arg5: memref<48x32xf32, #tpu.memory_space<vmem>>, %arg6: memref<2x32x96xf32, #tpu.memory_space<vmem>>, %arg7: memref<2x32x32xf32, #tpu.memory_space<vmem>>, %arg8: memref<2x32x64xf32, #tpu.memory_space<vmem>>, %arg9: memref<2x64x32xf32, #tpu.memory_space<vmem>>, %arg10: memref<2x4x32xf32, #tpu.memory_space<vmem>>, %arg11: memref<3x32xf32, #tpu.memory_space<vmem>>, %arg12: memref<32x10xf32, #tpu.memory_space<vmem>>, %arg13: memref<2x10xf32, #tpu.memory_space<vmem>>) attributes {dimension_semantics = [], scalar_prefetch = 0 : i64, scratch_operands = 0 : i64, tpu.core_type = #tpu.core_type<tc>} {
    %c0 = arith.constant 0 : index
    %c0_0 = arith.constant 0 : index
    %0 = vector.load %arg0[%c0, %c0_0] : memref<32x48xf32, #tpu.memory_space<vmem>>, vector<32x48xf32>
    %c0_1 = arith.constant 0 : index
    %c0_2 = arith.constant 0 : index
    %1 = vector.load %arg5[%c0_1, %c0_2] : memref<48x32xf32, #tpu.memory_space<vmem>>, vector<48x32xf32>
    %cst = arith.constant dense<0.000000e+00> : vector<32x32xf32>
    %2 = tpu.matmul %0, %1, %cst {dimension_numbers = #tpu.dot_dimension_numbers<[1], [0], [0], [1], [0, 0, 1, 1], [], []>} : vector<32x48xf32>, vector<48x32xf32>, vector<32x32xf32> -> vector<32x32xf32>
    %c0_3 = arith.constant 0 : index
    %c0_4 = arith.constant 0 : index
    %3 = vector.load %arg1[%c0_3, %c0_4] : memref<32x32xf32, #tpu.memory_space<vmem>>, vector<32x32xf32>
    %4 = arith.addf %2, %3 : vector<32x32xf32>
    %c0_5 = arith.constant 0 : index
    %c0_6 = arith.constant 0 : index
    %5 = vector.load %arg2[%c0_5, %c0_6] : memref<128x32xf32, #tpu.memory_space<vmem>>, vector<128x32xf32>
    %c0_7 = arith.constant 0 : index
    %c0_8 = arith.constant 0 : index
    %6 = vector.load %arg3[%c0_7, %c0_8] : memref<128x32xf32, #tpu.memory_space<vmem>>, vector<128x32xf32>
    %c0_9 = arith.constant 0 : index
    %c0_10 = arith.constant 0 : index
    %c0_11 = arith.constant 0 : index
    %7 = vector.load %arg6[%c0_9, %c0_10, %c0_11] : memref<2x32x96xf32, #tpu.memory_space<vmem>>, vector<1x32x96xf32>
    %8 = vector.shape_cast %7 : vector<1x32x96xf32> to vector<32x96xf32>
    %cst_12 = arith.constant dense<0.000000e+00> : vector<32x96xf32>
    %9 = tpu.matmul %4, %8, %cst_12 {dimension_numbers = #tpu.dot_dimension_numbers<[1], [0], [0], [1], [0, 0, 1, 1], [], []>} : vector<32x32xf32>, vector<32x96xf32>, vector<32x96xf32> -> vector<32x96xf32>
    %10 = vector.extract_strided_slice %9 {offsets = [0, 0], sizes = [32, 32], strides = [1, 1]} : vector<32x96xf32> to vector<32x32xf32>
    %11 = vector.extract_strided_slice %9 {offsets = [0, 32], sizes = [32, 32], strides = [1, 1]} : vector<32x96xf32> to vector<32x32xf32>
    %12 = vector.extract_strided_slice %9 {offsets = [0, 64], sizes = [32, 32], strides = [1, 1]} : vector<32x96xf32> to vector<32x32xf32>
    %13 = tpu.concatenate %10, %10, %10, %10 in 0 : vector<32x32xf32>, vector<32x32xf32>, vector<32x32xf32>, vector<32x32xf32> -> vector<128x32xf32>
    %14 = arith.mulf %13, %6 : vector<128x32xf32>
    %cst_13 = arith.constant dense<0.000000e+00> : vector<128x32xf32>
    %15 = tpu.matmul %14, %11, %cst_13 {dimension_numbers = #tpu.dot_dimension_numbers<[1], [1], [0], [0], [0, 0, 1, 0], [], []>} : vector<128x32xf32>, vector<32x32xf32>, vector<128x32xf32> -> vector<128x32xf32>
    %16 = arith.addf %15, %5 : vector<128x32xf32>
    %cst_14 = arith.constant dense<0xFF800000> : vector<128xf32>
    %17 = vector.multi_reduction <maximumf>, %16, %cst_14 [1] : vector<128x32xf32> to vector<128xf32>
    %18 = vector.shape_cast %17 : vector<128xf32> to vector<128x1xf32>
    %19 = vector.broadcast %18 : vector<128x1xf32> to vector<128x32xf32>
    %20 = arith.subf %16, %19 : vector<128x32xf32>
    %21 = math.exp %20 : vector<128x32xf32>
    %cst_15 = arith.constant dense<0.000000e+00> : vector<128xf32>
    %22 = vector.multi_reduction <add>, %21, %cst_15 [1] : vector<128x32xf32> to vector<128xf32>
    %23 = vector.shape_cast %22 : vector<128xf32> to vector<128x1xf32>
    %24 = tpu.reciprocal %23 {approx = true} : vector<128x1xf32> -> vector<128x1xf32>
    %25 = vector.broadcast %24 : vector<128x1xf32> to vector<128x32xf32>
    %26 = arith.mulf %21, %25 : vector<128x32xf32>
    %cst_16 = arith.constant dense<0.000000e+00> : vector<128x32xf32>
    %27 = tpu.matmul %26, %12, %cst_16 {dimension_numbers = #tpu.dot_dimension_numbers<[1], [0], [0], [1], [0, 0, 1, 1], [], []>} : vector<128x32xf32>, vector<32x32xf32>, vector<128x32xf32> -> vector<128x32xf32>
    %28 = arith.mulf %27, %6 : vector<128x32xf32>
    %29 = vector.extract_strided_slice %28 {offsets = [0, 0], sizes = [32, 32], strides = [1, 1]} : vector<128x32xf32> to vector<32x32xf32>
    %30 = vector.extract_strided_slice %28 {offsets = [32, 0], sizes = [32, 32], strides = [1, 1]} : vector<128x32xf32> to vector<32x32xf32>
    %31 = arith.addf %29, %30 : vector<32x32xf32>
    %32 = vector.extract_strided_slice %28 {offsets = [64, 0], sizes = [32, 32], strides = [1, 1]} : vector<128x32xf32> to vector<32x32xf32>
    %33 = arith.addf %31, %32 : vector<32x32xf32>
    %34 = vector.extract_strided_slice %28 {offsets = [96, 0], sizes = [32, 32], strides = [1, 1]} : vector<128x32xf32> to vector<32x32xf32>
    %35 = arith.addf %33, %34 : vector<32x32xf32>
    %c0_17 = arith.constant 0 : index
    %c0_18 = arith.constant 0 : index
    %c0_19 = arith.constant 0 : index
    %36 = vector.load %arg7[%c0_17, %c0_18, %c0_19] : memref<2x32x32xf32, #tpu.memory_space<vmem>>, vector<1x32x32xf32>
    %37 = vector.shape_cast %36 : vector<1x32x32xf32> to vector<32x32xf32>
    %cst_20 = arith.constant dense<0.000000e+00> : vector<32x32xf32>
    %38 = tpu.matmul %35, %37, %cst_20 {dimension_numbers = #tpu.dot_dimension_numbers<[1], [0], [0], [1], [0, 0, 1, 1], [], []>} : vector<32x32xf32>, vector<32x32xf32>, vector<32x32xf32> -> vector<32x32xf32>
    %c0_21 = arith.constant 0 : index
    %c0_22 = arith.constant 0 : index
    %c0_23 = arith.constant 0 : index
    %39 = vector.load %arg10[%c0_21, %c0_22, %c0_23] : memref<2x4x32xf32, #tpu.memory_space<vmem>>, vector<1x4x32xf32>
    %40 = vector.shape_cast %39 : vector<1x4x32xf32> to vector<4x32xf32>
    %41 = arith.addf %4, %38 : vector<32x32xf32>
    %42 = vector.extract_strided_slice %40 {offsets = [0, 0], sizes = [1, 32], strides = [1, 1]} : vector<4x32xf32> to vector<1x32xf32>
    %43 = vector.extract_strided_slice %40 {offsets = [1, 0], sizes = [1, 32], strides = [1, 1]} : vector<4x32xf32> to vector<1x32xf32>
    %cst_24 = arith.constant dense<0.000000e+00> : vector<32xf32>
    %44 = vector.multi_reduction <add>, %41, %cst_24 [1] : vector<32x32xf32> to vector<32xf32>
    %45 = vector.shape_cast %44 : vector<32xf32> to vector<32x1xf32>
    %cst_25 = arith.constant 3.200000e+01 : f32
    %46 = vector.broadcast %cst_25 : f32 to vector<32x1xf32>
    %47 = arith.divf %45, %46 : vector<32x1xf32>
    %48 = arith.mulf %41, %41 : vector<32x32xf32>
    %cst_26 = arith.constant dense<0.000000e+00> : vector<32xf32>
    %49 = vector.multi_reduction <add>, %48, %cst_26 [1] : vector<32x32xf32> to vector<32xf32>
    %50 = vector.shape_cast %49 : vector<32xf32> to vector<32x1xf32>
    %cst_27 = arith.constant 3.200000e+01 : f32
    %51 = vector.broadcast %cst_27 : f32 to vector<32x1xf32>
    %52 = arith.divf %50, %51 : vector<32x1xf32>
    %53 = arith.mulf %47, %47 : vector<32x1xf32>
    %54 = arith.subf %52, %53 : vector<32x1xf32>
    %55 = vector.broadcast %47 : vector<32x1xf32> to vector<32x32xf32>
    %56 = arith.subf %41, %55 : vector<32x32xf32>
    %cst_28 = arith.constant 9.99999974E-6 : f32
    %57 = vector.broadcast %cst_28 : f32 to vector<32x1xf32>
    %58 = arith.addf %54, %57 : vector<32x1xf32>
    %59 = math.rsqrt %58 : vector<32x1xf32>
    %60 = vector.broadcast %59 : vector<32x1xf32> to vector<32x32xf32>
    %61 = arith.mulf %56, %60 : vector<32x32xf32>
    %62 = vector.broadcast %42 : vector<1x32xf32> to vector<32x32xf32>
    %63 = arith.mulf %61, %62 : vector<32x32xf32>
    %64 = vector.broadcast %43 : vector<1x32xf32> to vector<32x32xf32>
    %65 = arith.addf %63, %64 : vector<32x32xf32>
    %c0_29 = arith.constant 0 : index
    %c0_30 = arith.constant 0 : index
    %c0_31 = arith.constant 0 : index
    %66 = vector.load %arg8[%c0_29, %c0_30, %c0_31] : memref<2x32x64xf32, #tpu.memory_space<vmem>>, vector<1x32x64xf32>
    %67 = vector.shape_cast %66 : vector<1x32x64xf32> to vector<32x64xf32>
    %cst_32 = arith.constant dense<0.000000e+00> : vector<32x64xf32>
    %68 = tpu.matmul %65, %67, %cst_32 {dimension_numbers = #tpu.dot_dimension_numbers<[1], [0], [0], [1], [0, 0, 1, 1], [], []>} : vector<32x32xf32>, vector<32x64xf32>, vector<32x64xf32> -> vector<32x64xf32>
    %cst_33 = arith.constant 0.000000e+00 : f32
    %69 = vector.broadcast %cst_33 : f32 to vector<32x64xf32>
    %70 = arith.maximumf %68, %69 : vector<32x64xf32>
    %c0_34 = arith.constant 0 : index
    %c0_35 = arith.constant 0 : index
    %c0_36 = arith.constant 0 : index
    %71 = vector.load %arg9[%c0_34, %c0_35, %c0_36] : memref<2x64x32xf32, #tpu.memory_space<vmem>>, vector<1x64x32xf32>
    %72 = vector.shape_cast %71 : vector<1x64x32xf32> to vector<64x32xf32>
    %cst_37 = arith.constant dense<0.000000e+00> : vector<32x32xf32>
    %73 = tpu.matmul %70, %72, %cst_37 {dimension_numbers = #tpu.dot_dimension_numbers<[1], [0], [0], [1], [0, 0, 1, 1], [], []>} : vector<32x64xf32>, vector<64x32xf32>, vector<32x32xf32> -> vector<32x32xf32>
    %74 = arith.addf %65, %73 : vector<32x32xf32>
    %75 = vector.extract_strided_slice %40 {offsets = [2, 0], sizes = [1, 32], strides = [1, 1]} : vector<4x32xf32> to vector<1x32xf32>
    %76 = vector.extract_strided_slice %40 {offsets = [3, 0], sizes = [1, 32], strides = [1, 1]} : vector<4x32xf32> to vector<1x32xf32>
    %cst_38 = arith.constant dense<0.000000e+00> : vector<32xf32>
    %77 = vector.multi_reduction <add>, %74, %cst_38 [1] : vector<32x32xf32> to vector<32xf32>
    %78 = vector.shape_cast %77 : vector<32xf32> to vector<32x1xf32>
    %cst_39 = arith.constant 3.200000e+01 : f32
    %79 = vector.broadcast %cst_39 : f32 to vector<32x1xf32>
    %80 = arith.divf %78, %79 : vector<32x1xf32>
    %81 = arith.mulf %74, %74 : vector<32x32xf32>
    %cst_40 = arith.constant dense<0.000000e+00> : vector<32xf32>
    %82 = vector.multi_reduction <add>, %81, %cst_40 [1] : vector<32x32xf32> to vector<32xf32>
    %83 = vector.shape_cast %82 : vector<32xf32> to vector<32x1xf32>
    %cst_41 = arith.constant 3.200000e+01 : f32
    %84 = vector.broadcast %cst_41 : f32 to vector<32x1xf32>
    %85 = arith.divf %83, %84 : vector<32x1xf32>
    %86 = arith.mulf %80, %80 : vector<32x1xf32>
    %87 = arith.subf %85, %86 : vector<32x1xf32>
    %88 = vector.broadcast %80 : vector<32x1xf32> to vector<32x32xf32>
    %89 = arith.subf %74, %88 : vector<32x32xf32>
    %cst_42 = arith.constant 9.99999974E-6 : f32
    %90 = vector.broadcast %cst_42 : f32 to vector<32x1xf32>
    %91 = arith.addf %87, %90 : vector<32x1xf32>
    %92 = math.rsqrt %91 : vector<32x1xf32>
    %93 = vector.broadcast %92 : vector<32x1xf32> to vector<32x32xf32>
    %94 = arith.mulf %89, %93 : vector<32x32xf32>
    %95 = vector.broadcast %75 : vector<1x32xf32> to vector<32x32xf32>
    %96 = arith.mulf %94, %95 : vector<32x32xf32>
    %97 = vector.broadcast %76 : vector<1x32xf32> to vector<32x32xf32>
    %98 = arith.addf %96, %97 : vector<32x32xf32>
    %c1 = arith.constant 1 : index
    %c0_43 = arith.constant 0 : index
    %c0_44 = arith.constant 0 : index
    %99 = vector.load %arg6[%c1, %c0_43, %c0_44] : memref<2x32x96xf32, #tpu.memory_space<vmem>>, vector<1x32x96xf32>
    %100 = vector.shape_cast %99 : vector<1x32x96xf32> to vector<32x96xf32>
    %cst_45 = arith.constant dense<0.000000e+00> : vector<32x96xf32>
    %101 = tpu.matmul %98, %100, %cst_45 {dimension_numbers = #tpu.dot_dimension_numbers<[1], [0], [0], [1], [0, 0, 1, 1], [], []>} : vector<32x32xf32>, vector<32x96xf32>, vector<32x96xf32> -> vector<32x96xf32>
    %102 = vector.extract_strided_slice %101 {offsets = [0, 0], sizes = [32, 32], strides = [1, 1]} : vector<32x96xf32> to vector<32x32xf32>
    %103 = vector.extract_strided_slice %101 {offsets = [0, 32], sizes = [32, 32], strides = [1, 1]} : vector<32x96xf32> to vector<32x32xf32>
    %104 = vector.extract_strided_slice %101 {offsets = [0, 64], sizes = [32, 32], strides = [1, 1]} : vector<32x96xf32> to vector<32x32xf32>
    %105 = tpu.concatenate %102, %102, %102, %102 in 0 : vector<32x32xf32>, vector<32x32xf32>, vector<32x32xf32>, vector<32x32xf32> -> vector<128x32xf32>
    %106 = arith.mulf %105, %6 : vector<128x32xf32>
    %cst_46 = arith.constant dense<0.000000e+00> : vector<128x32xf32>
    %107 = tpu.matmul %106, %103, %cst_46 {dimension_numbers = #tpu.dot_dimension_numbers<[1], [1], [0], [0], [0, 0, 1, 0], [], []>} : vector<128x32xf32>, vector<32x32xf32>, vector<128x32xf32> -> vector<128x32xf32>
    %108 = arith.addf %107, %5 : vector<128x32xf32>
    %cst_47 = arith.constant dense<0xFF800000> : vector<128xf32>
    %109 = vector.multi_reduction <maximumf>, %108, %cst_47 [1] : vector<128x32xf32> to vector<128xf32>
    %110 = vector.shape_cast %109 : vector<128xf32> to vector<128x1xf32>
    %111 = vector.broadcast %110 : vector<128x1xf32> to vector<128x32xf32>
    %112 = arith.subf %108, %111 : vector<128x32xf32>
    %113 = math.exp %112 : vector<128x32xf32>
    %cst_48 = arith.constant dense<0.000000e+00> : vector<128xf32>
    %114 = vector.multi_reduction <add>, %113, %cst_48 [1] : vector<128x32xf32> to vector<128xf32>
    %115 = vector.shape_cast %114 : vector<128xf32> to vector<128x1xf32>
    %116 = tpu.reciprocal %115 {approx = true} : vector<128x1xf32> -> vector<128x1xf32>
    %117 = vector.broadcast %116 : vector<128x1xf32> to vector<128x32xf32>
    %118 = arith.mulf %113, %117 : vector<128x32xf32>
    %cst_49 = arith.constant dense<0.000000e+00> : vector<128x32xf32>
    %119 = tpu.matmul %118, %104, %cst_49 {dimension_numbers = #tpu.dot_dimension_numbers<[1], [0], [0], [1], [0, 0, 1, 1], [], []>} : vector<128x32xf32>, vector<32x32xf32>, vector<128x32xf32> -> vector<128x32xf32>
    %120 = arith.mulf %119, %6 : vector<128x32xf32>
    %121 = vector.extract_strided_slice %120 {offsets = [0, 0], sizes = [32, 32], strides = [1, 1]} : vector<128x32xf32> to vector<32x32xf32>
    %122 = vector.extract_strided_slice %120 {offsets = [32, 0], sizes = [32, 32], strides = [1, 1]} : vector<128x32xf32> to vector<32x32xf32>
    %123 = arith.addf %121, %122 : vector<32x32xf32>
    %124 = vector.extract_strided_slice %120 {offsets = [64, 0], sizes = [32, 32], strides = [1, 1]} : vector<128x32xf32> to vector<32x32xf32>
    %125 = arith.addf %123, %124 : vector<32x32xf32>
    %126 = vector.extract_strided_slice %120 {offsets = [96, 0], sizes = [32, 32], strides = [1, 1]} : vector<128x32xf32> to vector<32x32xf32>
    %127 = arith.addf %125, %126 : vector<32x32xf32>
    %c1_50 = arith.constant 1 : index
    %c0_51 = arith.constant 0 : index
    %c0_52 = arith.constant 0 : index
    %128 = vector.load %arg7[%c1_50, %c0_51, %c0_52] : memref<2x32x32xf32, #tpu.memory_space<vmem>>, vector<1x32x32xf32>
    %129 = vector.shape_cast %128 : vector<1x32x32xf32> to vector<32x32xf32>
    %cst_53 = arith.constant dense<0.000000e+00> : vector<32x32xf32>
    %130 = tpu.matmul %127, %129, %cst_53 {dimension_numbers = #tpu.dot_dimension_numbers<[1], [0], [0], [1], [0, 0, 1, 1], [], []>} : vector<32x32xf32>, vector<32x32xf32>, vector<32x32xf32> -> vector<32x32xf32>
    %c1_54 = arith.constant 1 : index
    %c0_55 = arith.constant 0 : index
    %c0_56 = arith.constant 0 : index
    %131 = vector.load %arg10[%c1_54, %c0_55, %c0_56] : memref<2x4x32xf32, #tpu.memory_space<vmem>>, vector<1x4x32xf32>
    %132 = vector.shape_cast %131 : vector<1x4x32xf32> to vector<4x32xf32>
    %133 = arith.addf %98, %130 : vector<32x32xf32>
    %134 = vector.extract_strided_slice %132 {offsets = [0, 0], sizes = [1, 32], strides = [1, 1]} : vector<4x32xf32> to vector<1x32xf32>
    %135 = vector.extract_strided_slice %132 {offsets = [1, 0], sizes = [1, 32], strides = [1, 1]} : vector<4x32xf32> to vector<1x32xf32>
    %cst_57 = arith.constant dense<0.000000e+00> : vector<32xf32>
    %136 = vector.multi_reduction <add>, %133, %cst_57 [1] : vector<32x32xf32> to vector<32xf32>
    %137 = vector.shape_cast %136 : vector<32xf32> to vector<32x1xf32>
    %cst_58 = arith.constant 3.200000e+01 : f32
    %138 = vector.broadcast %cst_58 : f32 to vector<32x1xf32>
    %139 = arith.divf %137, %138 : vector<32x1xf32>
    %140 = arith.mulf %133, %133 : vector<32x32xf32>
    %cst_59 = arith.constant dense<0.000000e+00> : vector<32xf32>
    %141 = vector.multi_reduction <add>, %140, %cst_59 [1] : vector<32x32xf32> to vector<32xf32>
    %142 = vector.shape_cast %141 : vector<32xf32> to vector<32x1xf32>
    %cst_60 = arith.constant 3.200000e+01 : f32
    %143 = vector.broadcast %cst_60 : f32 to vector<32x1xf32>
    %144 = arith.divf %142, %143 : vector<32x1xf32>
    %145 = arith.mulf %139, %139 : vector<32x1xf32>
    %146 = arith.subf %144, %145 : vector<32x1xf32>
    %147 = vector.broadcast %139 : vector<32x1xf32> to vector<32x32xf32>
    %148 = arith.subf %133, %147 : vector<32x32xf32>
    %cst_61 = arith.constant 9.99999974E-6 : f32
    %149 = vector.broadcast %cst_61 : f32 to vector<32x1xf32>
    %150 = arith.addf %146, %149 : vector<32x1xf32>
    %151 = math.rsqrt %150 : vector<32x1xf32>
    %152 = vector.broadcast %151 : vector<32x1xf32> to vector<32x32xf32>
    %153 = arith.mulf %148, %152 : vector<32x32xf32>
    %154 = vector.broadcast %134 : vector<1x32xf32> to vector<32x32xf32>
    %155 = arith.mulf %153, %154 : vector<32x32xf32>
    %156 = vector.broadcast %135 : vector<1x32xf32> to vector<32x32xf32>
    %157 = arith.addf %155, %156 : vector<32x32xf32>
    %c1_62 = arith.constant 1 : index
    %c0_63 = arith.constant 0 : index
    %c0_64 = arith.constant 0 : index
    %158 = vector.load %arg8[%c1_62, %c0_63, %c0_64] : memref<2x32x64xf32, #tpu.memory_space<vmem>>, vector<1x32x64xf32>
    %159 = vector.shape_cast %158 : vector<1x32x64xf32> to vector<32x64xf32>
    %cst_65 = arith.constant dense<0.000000e+00> : vector<32x64xf32>
    %160 = tpu.matmul %157, %159, %cst_65 {dimension_numbers = #tpu.dot_dimension_numbers<[1], [0], [0], [1], [0, 0, 1, 1], [], []>} : vector<32x32xf32>, vector<32x64xf32>, vector<32x64xf32> -> vector<32x64xf32>
    %cst_66 = arith.constant 0.000000e+00 : f32
    %161 = vector.broadcast %cst_66 : f32 to vector<32x64xf32>
    %162 = arith.maximumf %160, %161 : vector<32x64xf32>
    %c1_67 = arith.constant 1 : index
    %c0_68 = arith.constant 0 : index
    %c0_69 = arith.constant 0 : index
    %163 = vector.load %arg9[%c1_67, %c0_68, %c0_69] : memref<2x64x32xf32, #tpu.memory_space<vmem>>, vector<1x64x32xf32>
    %164 = vector.shape_cast %163 : vector<1x64x32xf32> to vector<64x32xf32>
    %cst_70 = arith.constant dense<0.000000e+00> : vector<32x32xf32>
    %165 = tpu.matmul %162, %164, %cst_70 {dimension_numbers = #tpu.dot_dimension_numbers<[1], [0], [0], [1], [0, 0, 1, 1], [], []>} : vector<32x64xf32>, vector<64x32xf32>, vector<32x32xf32> -> vector<32x32xf32>
    %166 = arith.addf %157, %165 : vector<32x32xf32>
    %167 = vector.extract_strided_slice %132 {offsets = [2, 0], sizes = [1, 32], strides = [1, 1]} : vector<4x32xf32> to vector<1x32xf32>
    %168 = vector.extract_strided_slice %132 {offsets = [3, 0], sizes = [1, 32], strides = [1, 1]} : vector<4x32xf32> to vector<1x32xf32>
    %cst_71 = arith.constant dense<0.000000e+00> : vector<32xf32>
    %169 = vector.multi_reduction <add>, %166, %cst_71 [1] : vector<32x32xf32> to vector<32xf32>
    %170 = vector.shape_cast %169 : vector<32xf32> to vector<32x1xf32>
    %cst_72 = arith.constant 3.200000e+01 : f32
    %171 = vector.broadcast %cst_72 : f32 to vector<32x1xf32>
    %172 = arith.divf %170, %171 : vector<32x1xf32>
    %173 = arith.mulf %166, %166 : vector<32x32xf32>
    %cst_73 = arith.constant dense<0.000000e+00> : vector<32xf32>
    %174 = vector.multi_reduction <add>, %173, %cst_73 [1] : vector<32x32xf32> to vector<32xf32>
    %175 = vector.shape_cast %174 : vector<32xf32> to vector<32x1xf32>
    %cst_74 = arith.constant 3.200000e+01 : f32
    %176 = vector.broadcast %cst_74 : f32 to vector<32x1xf32>
    %177 = arith.divf %175, %176 : vector<32x1xf32>
    %178 = arith.mulf %172, %172 : vector<32x1xf32>
    %179 = arith.subf %177, %178 : vector<32x1xf32>
    %180 = vector.broadcast %172 : vector<32x1xf32> to vector<32x32xf32>
    %181 = arith.subf %166, %180 : vector<32x32xf32>
    %cst_75 = arith.constant 9.99999974E-6 : f32
    %182 = vector.broadcast %cst_75 : f32 to vector<32x1xf32>
    %183 = arith.addf %179, %182 : vector<32x1xf32>
    %184 = math.rsqrt %183 : vector<32x1xf32>
    %185 = vector.broadcast %184 : vector<32x1xf32> to vector<32x32xf32>
    %186 = arith.mulf %181, %185 : vector<32x32xf32>
    %187 = vector.broadcast %167 : vector<1x32xf32> to vector<32x32xf32>
    %188 = arith.mulf %186, %187 : vector<32x32xf32>
    %189 = vector.broadcast %168 : vector<1x32xf32> to vector<32x32xf32>
    %190 = arith.addf %188, %189 : vector<32x32xf32>
    %c0_76 = arith.constant 0 : index
    %c0_77 = arith.constant 0 : index
    %191 = vector.load %arg11[%c0_76, %c0_77] : memref<3x32xf32, #tpu.memory_space<vmem>>, vector<3x32xf32>
    %192 = vector.extract_strided_slice %191 {offsets = [0, 0], sizes = [1, 32], strides = [1, 1]} : vector<3x32xf32> to vector<1x32xf32>
    %193 = vector.extract_strided_slice %191 {offsets = [1, 0], sizes = [1, 32], strides = [1, 1]} : vector<3x32xf32> to vector<1x32xf32>
    %cst_78 = arith.constant dense<0.000000e+00> : vector<32xf32>
    %194 = vector.multi_reduction <add>, %190, %cst_78 [1] : vector<32x32xf32> to vector<32xf32>
    %195 = vector.shape_cast %194 : vector<32xf32> to vector<32x1xf32>
    %cst_79 = arith.constant 3.200000e+01 : f32
    %196 = vector.broadcast %cst_79 : f32 to vector<32x1xf32>
    %197 = arith.divf %195, %196 : vector<32x1xf32>
    %198 = arith.mulf %190, %190 : vector<32x32xf32>
    %cst_80 = arith.constant dense<0.000000e+00> : vector<32xf32>
    %199 = vector.multi_reduction <add>, %198, %cst_80 [1] : vector<32x32xf32> to vector<32xf32>
    %200 = vector.shape_cast %199 : vector<32xf32> to vector<32x1xf32>
    %cst_81 = arith.constant 3.200000e+01 : f32
    %201 = vector.broadcast %cst_81 : f32 to vector<32x1xf32>
    %202 = arith.divf %200, %201 : vector<32x1xf32>
    %203 = arith.mulf %197, %197 : vector<32x1xf32>
    %204 = arith.subf %202, %203 : vector<32x1xf32>
    %205 = vector.broadcast %197 : vector<32x1xf32> to vector<32x32xf32>
    %206 = arith.subf %190, %205 : vector<32x32xf32>
    %cst_82 = arith.constant 9.99999974E-6 : f32
    %207 = vector.broadcast %cst_82 : f32 to vector<32x1xf32>
    %208 = arith.addf %204, %207 : vector<32x1xf32>
    %209 = math.rsqrt %208 : vector<32x1xf32>
    %210 = vector.broadcast %209 : vector<32x1xf32> to vector<32x32xf32>
    %211 = arith.mulf %206, %210 : vector<32x32xf32>
    %212 = vector.broadcast %192 : vector<1x32xf32> to vector<32x32xf32>
    %213 = arith.mulf %211, %212 : vector<32x32xf32>
    %214 = vector.broadcast %193 : vector<1x32xf32> to vector<32x32xf32>
    %215 = arith.addf %213, %214 : vector<32x32xf32>
    %c0_83 = arith.constant 0 : index
    %c0_84 = arith.constant 0 : index
    %216 = vector.load %arg4[%c0_83, %c0_84] : memref<2x32xf32, #tpu.memory_space<vmem>>, vector<2x32xf32>
    %cst_85 = arith.constant dense<0.000000e+00> : vector<2x32xf32>
    %217 = tpu.matmul %216, %215, %cst_85 {dimension_numbers = #tpu.dot_dimension_numbers<[1], [0], [0], [1], [0, 0, 1, 1], [], []>} : vector<2x32xf32>, vector<32x32xf32>, vector<2x32xf32> -> vector<2x32xf32>
    %c0_86 = arith.constant 0 : index
    %c0_87 = arith.constant 0 : index
    %218 = vector.load %arg12[%c0_86, %c0_87] : memref<32x10xf32, #tpu.memory_space<vmem>>, vector<32x10xf32>
    %cst_88 = arith.constant dense<0.000000e+00> : vector<2x10xf32>
    %219 = tpu.matmul %217, %218, %cst_88 {dimension_numbers = #tpu.dot_dimension_numbers<[1], [0], [0], [1], [0, 0, 1, 1], [], []>} : vector<2x32xf32>, vector<32x10xf32>, vector<2x10xf32> -> vector<2x10xf32>
    %220 = vector.extract_strided_slice %191 {offsets = [2, 0], sizes = [1, 10], strides = [1, 1]} : vector<3x32xf32> to vector<1x10xf32>
    %221 = vector.broadcast %220 : vector<1x10xf32> to vector<2x10xf32>
    %222 = arith.addf %219, %221 : vector<2x10xf32>
    %c0_89 = arith.constant 0 : index
    %c0_90 = arith.constant 0 : index
    %223 = vector.load %arg13[%c0_89, %c0_90] : memref<2x10xf32, #tpu.memory_space<vmem>>, vector<2x10xf32>
    tpu.vector_store %arg13[%c0_89, %c0_90], %222 {strides = array<i32>} : memref<2x10xf32, #tpu.memory_space<vmem>>, vector<2x10xf32>,
    return
  }
}

</mosaic_0001>

<bundles_post_ra>
// kernel: transformer_encoder_forward.1
= control target key start
LH: loop header
LB: loop body
LE: loop exit
PB: predicated region body
PF: predicated region fallthrough
CT: control target
= control target key end

     0   :  { %s3847_s0 = inlined_call_operand.vmem [shape: f32[32,48], index: 0, kind: input, shape index: {}]   ;;  %s3848_s1 = inlined_call_operand.vmem [shape: f32[32,32], index: 1, kind: input, shape index: {}]   ;;  %s3849_s2 = inlined_call_operand.vmem [shape: f32[128,32], index: 2, kind: input, shape index: {}]   ;;  %s3850_s3 = inlined_call_operand.vmem [shape: f32[128,32], index: 3, kind: input, shape index: {}]   ;;  %s3851_s4 = inlined_call_operand.vmem [shape: f32[2,32], index: 4, kind: input, shape index: {}]   ;;  %s3852_s5 = inlined_call_operand.vmem [shape: f32[48,32], index: 5, kind: input, shape index: {}]   ;;  %s3853_s6 = inlined_call_operand.vmem [shape: f32[2,32,96], index: 6, kind: input, shape index: {}]   ;;  %s3854_s7 = inlined_call_operand.vmem [shape: f32[2,32,32], index: 7, kind: input, shape index: {}]   ;;  %s3855_s8 = inlined_call_operand.vmem [shape: f32[2,32,64], index: 8, kind: input, shape index: {}]   ;;  %s3856_s9 = inlined_call_operand.vmem [shape: f32[2,64,32], index: 9, kind: input, shape index: {}]   ;;  %s3857_s10 = inlined_call_operand.vmem [shape: f32[2,4,32], index: 10, kind: input, shape index: {}]   ;;  %s3858_s11 = inlined_call_operand.vmem [shape: f32[3,32], index: 11, kind: input, shape index: {}]   ;;  %s3859_s12 = inlined_call_operand.vmem [shape: f32[32,10], index: 12, kind: input, shape index: {}]   ;;  %s3860_s13 = inlined_call_operand.hbm [shape: f32[2,10], index: 13, kind: output, shape index: {}]  }
   0x1   :  { %v54_v0 = vld [vmem:[%s3852_s5 + $0x28] sm:$0xff]  ;;  %v53_v1 = vld [vmem:[%s3852_s5 + $0x20] sm:$0xff]  ;;  %v52_v2 = vld [vmem:[%s3852_s5 + $0x18] sm:$0xff] }
   0x2   :  { %82 = vmatpush.msra.mxu0 %v54_v0  ;;  %2229 = vmatpush.msra.mxu2 %v54_v0  ;;  %v136_v3 = vld [vmem:[%s3853_s6 + $0x18] sm:$0xff]  ;;  %v135_v4 = vld [vmem:[%s3853_s6 + $0x10] sm:$0xff] }
   0x3   :  { %v51_v5 = vld [vmem:[%s3852_s5 + $0x10] sm:$0xff]  ;;  %162 = vmatpush.msra.mxu1 %v136_v3  ;;  %2235 = vmatpush.msra.mxu3 %v136_v3 }
   0x4   :  { %83 = vmatpush.msra.mxu0 %v53_v1  ;;  %2230 = vmatpush.msra.mxu2 %v53_v1 }
   0x5   :  { %18 = vsyncpa [#allocation3], 0  ;;  %v50_v6 = vld [vmem:[%s3852_s5 + $0x8] sm:$0xff]  ;;  %163 = vmatpush.msra.mxu1 %v135_v4  ;;  %2236 = vmatpush.msra.mxu3 %v135_v4  ;;  %v49_v7 = vld [vmem:[%s3852_s5] sm:$0xff]  ;;  %vm59_vm0 = vcmask 392192   ;;  %vm137_vm1 = vcmask 261120  }
   0x6   :  { %84 = vmatpush.msra.mxu0 %v52_v2  ;;  %2231 = vmatpush.msra.mxu2 %v52_v2  ;;  %v45_v8 = vld [vmem:[%s3847_s0] sm:$0xff]  ;;  %v46_v9 = vld [vmem:[%s3847_s0 + $0x8] sm:$0xff]  ;;  %v47_v10 = vld [vmem:[%s3847_s0 + $0x10] sm:$0xff]  ;;  %s2491_s25 = smov 96   ;;  %s2492_s15 = smov 64   ;;  %vm877_vm15 = vcmask 523264  }
   0x7   :  { %v48_v11 = vld [vmem:[%s3847_s0 + $0x18] sm:$0xff]  ;;  %v134_v12 = vld [vmem:[%s3853_s6 + $0x8] sm:$0xff]  ;;  %v133_v13 = vld [vmem:[%s3853_s6] sm:$0xff]  ;;  %s2089_s18 = sshll.u32 %s3860_s13, 4  ;;  %s2090_s18 = int_to_ptr.hbm [resolvable:$true] %s2089_s18 }
   0x8   :  { %85 = vmatpush.msra.mxu0 %v51_v5  ;;  %2232 = vmatpush.msra.mxu2 %v51_v5  ;;  %v55_v14 = vld [vmem:[%s3848_s1] sm:$0xff]  ;;  %v56_v17 = vld [vmem:[%s3848_s1 + $0x8] sm:$0xff]  ;;  %v57_v20 = vld [vmem:[%s3848_s1 + $0x10] sm:$0xff] }
   0x9   :  { %164 = vmatpush.msra.mxu1 %v134_v12  ;;  %2237 = vmatpush.msra.mxu3 %v134_v12  ;;  %v58_v23 = vld [vmem:[%s3848_s1 + $0x18] sm:$0xff]  ;;  %v2657_v33 = vld [vmem:[%s3850_s3] sm:$0xff]  ;;  %v2666_v36 = vld [vmem:[%s3850_s3 + $0x8] sm:$0xff] }
   0xa   :  { %86 = vmatpush.msra.mxu0 %v50_v6  ;;  %2233 = vmatpush.msra.mxu2 %v50_v6  ;;  %v2674_v38 = vld [vmem:[%s3850_s3 + $0x10] sm:$0xff]  ;;  %v2682_v40 = vld [vmem:[%s3850_s3 + $0x18] sm:$0xff]  ;;  %v2690_v42 = vld [vmem:[%s3850_s3 + $0x20] sm:$0xff] }
   0xb   :  { %165 = vmatpush.msra.mxu1 %v133_v13  ;;  %2238 = vmatpush.msra.mxu3 %v133_v13  ;;  %v2698_v44 = vld [vmem:[%s3850_s3 + $0x28] sm:$0xff]  ;;  %v2706_v46 = vld [vmem:[%s3850_s3 + $0x30] sm:$0xff]  ;;  %v2714_v48 = vld [vmem:[%s3850_s3 + $0x38] sm:$0xff] }
   0xc   :  { %87 = vmatpush.msra.mxu0 %v49_v7  ;;  %2234 = vmatpush.msra.mxu2 %v49_v7  ;;  %v2722_v50 = vld [vmem:[%s3850_s3 + $0x40] sm:$0xff]  ;;  %v2730_v52 = vld [vmem:[%s3850_s3 + $0x48] sm:$0xff]  ;;  %v2738_v54 = vld [vmem:[%s3850_s3 + $0x50] sm:$0xff] }
   0xd   :  { %2098 = vmatmul.msk.f32.vlgmr.msra.gmra.mxu0 %vm59_vm0, %v45_v8  ;;  %2099 = vmatmul.msk.f32.vlgmr.msra.gmra.mxu2 %vm59_vm0, %v46_v9  ;;  %v2746_v56 = vld [vmem:[%s3850_s3 + $0x58] sm:$0xff]  ;;  %v2754_v58 = vld [vmem:[%s3850_s3 + $0x60] sm:$0xff]  ;;  %v2762_v60 = vld [vmem:[%s3850_s3 + $0x68] sm:$0xff] }
   0xe   :  { %v2770_v62 = vld [vmem:[%s3850_s3 + $0x70] sm:$0xff]  ;;  %v2778_v0 = vld [vmem:[%s3850_s3 + $0x78] sm:$0xff]  ;;  %v101_v2 = vld [vmem:[%s3849_s2] sm:$0xff] }
   0xf   :  { %v102_v6 = vld [vmem:[%s3849_s2 + $0x8] sm:$0xff] }
  0x15   :  { %2100 = vmatmul.msk.f32.gmra.mxu2 %vm59_vm0, %v47_v10  ;;  %v103_v10 = vld [vmem:[%s3849_s2 + $0x10] sm:$0xff] }
  0x1d   :  { %2101 = vmatmul.msk.f32.gmra.mxu2 %vm59_vm0, %v48_v11 }
  0x8a   :  { %v89_v15 = vpop.f32.mrf.mxu0 }
  0x8b   :  { %v2610_v16 = vadd.f32 %v89_v15, %v55_v14  ;;  %v104_v14 = vld [vmem:[%s3849_s2 + $0x18] sm:$0xff] }
  0x8d   :  { %2102 = vmatmul.msk.f32.vlgmr.msra.gmra.mxu1 %vm137_vm1, %v2610_v16 }
  0x90   :  { %v92_v18 = vpop.f32.mrf.mxu2 }
  0x91   :  { %v2617_v19 = vadd.f32 %v92_v18, %v56_v17 }
  0x95   :  { %2103 = vmatmul.msk.f32.gmra.mxu1 %vm137_vm1, %v2617_v19 }
  0x98   :  { %v95_v21 = vpop.f32.mrf.mxu2 }
  0x99   :  { %v2624_v22 = vadd.f32 %v95_v21, %v57_v20  ;;  %v105_v20 = vld [vmem:[%s3849_s2 + $0x20] sm:$0xff] }
  0x9b   :  { %2104 = vmatmul.msk.f32.vlgmr.msra.gmra.mxu3 %vm137_vm1, %v2624_v22 }
  0xa0   :  { %v98_v24 = vpop.f32.mrf.mxu2 }
  0xa1   :  { %v2631_v25 = vadd.f32 %v98_v24, %v58_v23 }
  0xa3   :  { %2105 = vmatmul.msk.f32.gmra.mxu3 %vm137_vm1, %v2631_v25 }
 0x10a   :  { %v2635_v26 = vpop.f32.mrf.mxu1 }
 0x10b   :  { %v179_v35 = vmul.f32 %v2635_v26, %v2657_v33  ;;  %v183_v43 = vmul.f32 %v2635_v26, %v2690_v42  ;;  %v187_v51 = vmul.f32 %v2635_v26, %v2722_v50  ;;  %v191_v59 = vmul.f32 %v2635_v26, %v2754_v58 }
 0x112   :  { %v2637_v27 = vpop.f32.mrf.mxu1 }
 0x113   :  { %201 = vrot.lane.b32.xlu1 %v2637_v27, %s2491_s25  ;;  %v180_v37 = vmul.f32 %v2637_v27, %v2666_v36  ;;  %v184_v45 = vmul.f32 %v2637_v27, %v2698_v44  ;;  %v188_v53 = vmul.f32 %v2637_v27, %v2730_v52  ;;  %v192_v61 = vmul.f32 %v2637_v27, %v2762_v60 }
 0x11b   :  { %199 = vrot.lane.b32.xlu1 %v2635_v26, %s2491_s25 }
 0x11e   :  { %v2643_v28 = vpop.f32.mrf.mxu3 }
 0x11f   :  { %v181_v39 = vmul.f32 %v2643_v28, %v2674_v38  ;;  %v185_v47 = vmul.f32 %v2643_v28, %v2706_v46  ;;  %v189_v55 = vmul.f32 %v2643_v28, %v2738_v54  ;;  %v193_v63 = vmul.f32 %v2643_v28, %v2770_v62 }
 0x126   :  { %v2645_v29 = vpop.f32.mrf.mxu3 }
 0x127   :  { %205 = vrot.lane.b32.xlu0 %v2645_v29, %s2491_s25  ;;  %v182_v41 = vmul.f32 %v2645_v29, %v2682_v40  ;;  %v186_v49 = vmul.f32 %v2645_v29, %v2714_v48  ;;  %v190_v57 = vmul.f32 %v2645_v29, %v2746_v56  ;;  %v194_v1 = vmul.f32 %v2645_v29, %v2778_v0 }
 0x12f   :  { %203 = vrot.lane.b32.xlu0 %v2643_v28, %s2491_s25 }
 0x185   :  { %v202_v31 = vpop.permute.xlu1 %201 }
 0x18d   :  { %v200_v34 = vpop.permute.xlu1 %199 }
 0x199   :  { %v206_v30 = vpop.permute.xlu0 %205 }
 0x19a   :  { %2106 = vmatpush.xpose.msk.msrb.mxu2 %vm137_vm1, %v206_v30  ;;  %v106_v30 = vld [vmem:[%s3849_s2 + $0x28] sm:$0xff] }
 0x1a1   :  { %v204_v32 = vpop.permute.xlu0 %203 }
 0x1a2   :  { %2107 = vmatpush.xpose.msk.msrb.mxu2 %vm137_vm1, %v204_v32 }
 0x1a6   :  { %2108 = vmatpush.xpose.msk.msrb.mxu2 %vm137_vm1, %v202_v31 }
 0x1aa   :  { %2109 = vmatpush.xpose.msk.msrb.mxu2 %vm137_vm1, %v200_v34 }
 0x1ad   :  { %2110 = vmatmul.msk.f32.vlgmr.msrb.gmra.mxu2 %vm137_vm1, %v179_v35  ;;  %v107_v35 = vld [vmem:[%s3849_s2 + $0x30] sm:$0xff] }
 0x1b5   :  { %2111 = vmatmul.msk.f32.gmra.mxu2 %vm137_vm1, %v180_v37 }
 0x1bd   :  { %2112 = vmatmul.msk.f32.gmra.mxu2 %vm137_vm1, %v181_v39 }
 0x1c5   :  { %2113 = vmatmul.msk.f32.gmra.mxu2 %vm137_vm1, %v182_v41 }
 0x1cd   :  { %2114 = vmatmul.msk.f32.gmra.mxu2 %vm137_vm1, %v183_v43  ;;  %v2248_v43 = vpack.i.bf16 %v2635_v26, %v2637_v27  ;;  %v110_v26 = vld [vmem:[%s3849_s2 + $0x48] sm:$0xff] }
 0x1d5   :  { %2115 = vmatmul.msk.f32.gmra.mxu2 %vm137_vm1, %v184_v45  ;;  %v108_v45 = vld [vmem:[%s3849_s2 + $0x38] sm:$0xff] }
 0x1dd   :  { %2116 = vmatmul.msk.f32.gmra.mxu2 %vm137_vm1, %v185_v47 }
 0x1e5   :  { %2117 = vmatmul.msk.f32.gmra.mxu2 %vm137_vm1, %v186_v49 }
 0x1ed   :  { %2118 = vmatmul.msk.f32.gmra.mxu2 %vm137_vm1, %v187_v51 }
 0x1f5   :  { %2119 = vmatmul.msk.f32.gmra.mxu2 %vm137_vm1, %v188_v53 }
 0x1fd   :  { %2120 = vmatmul.msk.f32.gmra.mxu2 %vm137_vm1, %v189_v55 }
 0x205   :  { %2121 = vmatmul.msk.f32.gmra.mxu2 %vm137_vm1, %v190_v57 }
 0x20d   :  { %2122 = vmatmul.msk.f32.gmra.mxu2 %vm137_vm1, %v191_v59 }
 0x215   :  { %2123 = vmatmul.msk.f32.gmra.mxu2 %vm137_vm1, %v192_v61 }
 0x21d   :  { %2124 = vmatmul.msk.f32.gmra.mxu2 %vm137_vm1, %v193_v63 }
 0x225   :  { %2125 = vmatmul.msk.f32.gmra.mxu2 %vm137_vm1, %v194_v1 }
 0x230   :  { %v280_v3 = vpop.f32.mrf.mxu2 }
 0x231   :  { %v281_v4 = vadd.f32 %v280_v3, %v101_v2 }
 0x233   :  { %v328_v5 = vsel %vm137_vm1, %v281_v4, -inf }
 0x234   :  { %329 = vmax.xlane.f32.xlu2 %v328_v5 }
 0x238   :  { %v283_v7 = vpop.f32.mrf.mxu2 }
 0x239   :  { %v284_v8 = vadd.f32 %v283_v7, %v102_v6 }
 0x23b   :  { %v331_v9 = vsel %vm137_vm1, %v284_v8, -inf }
 0x23c   :  { %332 = vmax.xlane.f32.xlu2 %v331_v9 }
 0x240   :  { %v286_v11 = vpop.f32.mrf.mxu2 }
 0x241   :  { %v287_v12 = vadd.f32 %v286_v11, %v103_v10 }
 0x243   :  { %v334_v13 = vsel %vm137_vm1, %v287_v12, -inf }
 0x244   :  { %335 = vmax.xlane.f32.xlu0 %v334_v13 }
 0x248   :  { %v289_v15 = vpop.f32.mrf.mxu2 }
 0x249   :  { %v290_v17 = vadd.f32 %v289_v15, %v104_v14 }
 0x24b   :  { %v337_v18 = vsel %vm137_vm1, %v290_v17, -inf }
 0x24c   :  { %338 = vmax.xlane.f32.xlu1 %v337_v18 }
 0x250   :  { %v292_v21 = vpop.f32.mrf.mxu2 }
 0x251   :  { %v293_v23 = vadd.f32 %v292_v21, %v105_v20 }
 0x253   :  { %v340_v24 = vsel %vm137_vm1, %v293_v23, -inf }
 0x254   :  { %341 = vmax.xlane.f32.xlu2 %v340_v24 }
 0x258   :  { %v295_v31 = vpop.f32.mrf.mxu2 }
 0x259   :  { %v2806_v32 = vadd.f32 %v295_v31, %v106_v30 }
 0x25b   :  { %v343_v34 = vsel %vm137_vm1, %v2806_v32, -inf }
 0x25c   :  { %344 = vmax.xlane.f32.xlu2 %v343_v34 }
 0x260   :  { %v298_v37 = vpop.f32.mrf.mxu2 }
 0x261   :  { %v2813_v39 = vadd.f32 %v298_v37, %v107_v35  ;;  %v2243_v35 = vpack.i.bf16 %v2643_v28, %v2645_v29  ;;  %v112_v28 = vld [vmem:[%s3849_s2 + $0x58] sm:$0xff] }
 0x263   :  { %v346_v41 = vsel %vm137_vm1, %v2813_v39, -inf }
 0x264   :  { %347 = vmax.xlane.f32.xlu2 %v346_v41 }
 0x265   :  { %2249 = vrot.lane.b32.xlu1 %v2248_v43, %s2492_s15 }
 0x268   :  { %v301_v47 = vpop.f32.mrf.mxu2 }
 0x269   :  { %v2823_v49 = vadd.f32 %v301_v47, %v108_v45 }
 0x26b   :  { %v349_v51 = vsel %vm137_vm1, %v2823_v49, -inf }
 0x26c   :  { %350 = vmax.xlane.f32.xlu0 %v349_v51 }
 0x270   :  { %v2827_v53 = vpop.f32.mrf.mxu2 }
 0x278   :  { %v307_v27 = vpop.f32.mrf.mxu2 }
 0x279   :  { %v2832_v55 = vadd.f32 %v307_v27, %v110_v26  ;;  %v113_v26 = vld [vmem:[%s3849_s2 + $0x60] sm:$0xff] }
 0x27b   :  { %v355_v57 = vsel %vm137_vm1, %v2832_v55, -inf }
 0x27c   :  { %356 = vmax.xlane.f32.xlu0 %v355_v57 }
 0x280   :  { %v310_v11 = vpop.f32.mrf.mxu2 }
 0x288   :  { %v313_v21 = vpop.f32.mrf.mxu2 }
 0x289   :  { %v2869_v29 = vadd.f32 %v313_v21, %v112_v28 }
 0x28b   :  { %v361_v51 = vsel %vm137_vm1, %v2869_v29, -inf }
 0x290   :  { %v316_v43 = vpop.f32.mrf.mxu2 }
 0x291   :  { %v2876_v57 = vadd.f32 %v316_v43, %v113_v26  ;;  %v115_v43 = vld [vmem:[%s3849_s2 + $0x70] sm:$0xff] }
 0x298   :  { %v319_v47 = vpop.f32.mrf.mxu2 }
 0x2a7   :  { %v330_v59 = vpop.xlane.xlu2 %329 }
 0x2a8   :  { %v376_v61 = vsub.f32 %v281_v4, %v330_v59 }
 0x2aa   :  { %v392_v63 = vmul.f32 1.442695, %v376_v61  ;;  %v322_v61 = vpop.f32.mrf.mxu2 }
 0x2ab   :  { %v2921_v28 = vadd.f32 %v322_v61, %v115_v43 }
 0x2ac   :  { %2263 = vpow2.f32 %v392_v63 }
 0x2af   :  { %v333_v1 = vpop.xlane.xlu2 %332 }
 0x2b0   :  { %v377_v2 = vsub.f32 %v284_v8, %v333_v1  ;;  %v364_v1 = vsel %vm137_vm1, %v2876_v57, -inf }
 0x2b2   :  { %v2836_v3 = vpop.eup %2263  ;;  %v394_v5 = vmul.f32 1.442695, %v377_v2  ;;  %v114_v2 = vld [vmem:[%s3849_s2 + $0x68] sm:$0xff] }
 0x2b3   :  { %v424_v6 = vsel %vm137_vm1, %v2836_v3, 0.0 }
 0x2b4   :  { %2265 = vpow2.f32 %v394_v5  ;;  %425 = vadd.xlane.f32.xlu2 %v424_v6  ;;  %v2884_v6 = vadd.f32 %v319_v47, %v114_v2  ;;  %v370_v47 = vsel %vm137_vm1, %v2921_v28, -inf }
 0x2b7   :  { %v336_v7 = vpop.xlane.xlu0 %335 }
 0x2b8   :  { %v378_v9 = vsub.f32 %v287_v12, %v336_v7  ;;  %v111_v12 = vld [vmem:[%s3849_s2 + $0x50] sm:$0xff] }
 0x2b9   :  { %v2851_v30 = vadd.f32 %v310_v11, %v111_v12  ;;  %v116_v11 = vld [vmem:[%s3849_s2 + $0x78] sm:$0xff] }
 0x2ba   :  { %v2840_v10 = vpop.eup %2265  ;;  %v396_v13 = vmul.f32 1.442695, %v378_v9 }
 0x2bb   :  { %v427_v4 = vsel %vm137_vm1, %v2840_v10, 0.0  ;;  %v358_v41 = vsel %vm137_vm1, %v2851_v30, -inf }
 0x2bc   :  { %2267 = vpow2.f32 %v396_v13  ;;  %428 = vadd.xlane.f32.xlu0 %v427_v4  ;;  %v325_v13 = vpop.f32.mrf.mxu2  ;;  %v367_v4 = vsel %vm137_vm1, %v2884_v6, -inf }
 0x2bf   :  { %v339_v8 = vpop.xlane.xlu1 %338 }
 0x2c0   :  { %v379_v14 = vsub.f32 %v290_v17, %v339_v8  ;;  %v109_v8 = vld [vmem:[%s3849_s2 + $0x40] sm:$0xff] }
 0x2c2   :  { %v2844_v15 = vpop.eup %2267  ;;  %v398_v18 = vmul.f32 1.442695, %v379_v14  ;;  %v2899_v14 = vadd.f32 %v325_v13, %v116_v11 }
 0x2c3   :  { %v430_v20 = vsel %vm137_vm1, %v2844_v15, 0.0 }
 0x2c4   :  { %2269 = vpow2.f32 %v398_v18  ;;  %431 = vadd.xlane.f32.xlu0 %v430_v20  ;;  %v2902_v18 = vadd.f32 %v2827_v53, %v109_v8  ;;  %v373_v12 = vsel %vm137_vm1, %v2899_v14, -inf }
 0x2c7   :  { %v342_v24 = vpop.xlane.xlu2 %341 }
 0x2c8   :  { %v380_v31 = vsub.f32 %v293_v23, %v342_v24  ;;  %v352_v24 = vsel %vm137_vm1, %v2902_v18, -inf }
 0x2ca   :  { %v2853_v34 = vpop.eup %2269  ;;  %v400_v17 = vmul.f32 1.442695, %v380_v31 }
 0x2cb   :  { %v433_v37 = vsel %vm137_vm1, %v2853_v34, 0.0 }
 0x2cc   :  { %2271 = vpow2.f32 %v400_v17  ;;  %434 = vadd.xlane.f32.xlu1 %v433_v37  ;;  %2244 = vrot.lane.b32.xlu2 %v2243_v35, %s2492_s15 }
 0x2cd   :  { %359 = vmax.xlane.f32.xlu0 %v358_v41 }
 0x2cf   :  { %v345_v5 = vpop.xlane.xlu2 %344 }
 0x2d0   :  { %v381_v9 = vsub.f32 %v2806_v32, %v345_v5 }
 0x2d2   :  { %v2862_v45 = vpop.eup %2271  ;;  %v402_v32 = vmul.f32 1.442695, %v381_v9 }
 0x2d3   :  { %v436_v23 = vsel %vm137_vm1, %v2862_v45, 0.0 }
 0x2d5   :  { %437 = vadd.xlane.f32.xlu0 %v436_v23 }
 0x2d7   :  { %v348_v20 = vpop.xlane.xlu2 %347 }
 0x2d8   :  { %v382_v21 = vsub.f32 %v2813_v39, %v348_v20 }
 0x2da   :  { %v404_v31 = vmul.f32 1.442695, %v382_v21 }
 0x2dd   :  { %362 = vmax.xlane.f32.xlu0 %v361_v51 }
 0x2df   :  { %v351_v27 = vpop.xlane.xlu0 %350 }
 0x2e0   :  { %v383_v59 = vsub.f32 %v2823_v49, %v351_v27 }
 0x2e2   :  { %v406_v63 = vmul.f32 1.442695, %v383_v59 }
 0x2e4   :  { %2273 = vpow2.f32 %v406_v63 }
 0x2e5   :  { %365 = vmax.xlane.f32.xlu0 %v364_v1  ;;  %2275 = vpow2.f32 %v402_v32  ;;  %v2250_v1 = vpop.permute.xlu1 %2249 }
 0x2e6   :  { %2277 = vpow2.f32 %v404_v31  ;;  %v2251_v5 = vunpack.i.l.bf16 %v2250_v1  ;;  %v2252_v9 = vunpack.i.h.bf16 %v2250_v1 }
 0x2ea   :  { %v2886_v7 = vpop.eup %2273 }
 0x2eb   :  { %v445_v49 = vsel %vm137_vm1, %v2886_v7, 0.0  ;;  %v2909_v17 = vpop.eup %2275 }
 0x2ec   :  { %446 = vadd.xlane.f32.xlu1 %v445_v49  ;;  %v439_v53 = vsel %vm137_vm1, %v2909_v17, 0.0  ;;  %v2913_v37 = vpop.eup %2277 }
 0x2ed   :  { %368 = vmax.xlane.f32.xlu0 %v367_v4  ;;  %v442_v41 = vsel %vm137_vm1, %v2913_v37, 0.0 }
 0x2ef   :  { %v357_v35 = vpop.xlane.xlu0 %356 }
 0x2f0   :  { %v385_v39 = vsub.f32 %v2832_v55, %v357_v35 }
 0x2f2   :  { %v410_v23 = vmul.f32 1.442695, %v385_v39 }
 0x2f4   :  { %374 = vmax.xlane.f32.xlu1 %v373_v12  ;;  %2279 = vpow2.f32 %v410_v23 }
 0x2f5   :  { %353 = vmax.xlane.f32.xlu2 %v352_v24 }
 0x2fa   :  { %v2925_v51 = vpop.eup %2279 }
 0x2fb   :  { %v451_v55 = vsel %vm137_vm1, %v2925_v51, 0.0 }
 0x2fd   :  { %440 = vadd.xlane.f32.xlu2 %v439_v53 }
 0x305   :  { %443 = vadd.xlane.f32.xlu2 %v442_v41 }
 0x30d   :  { %371 = vmax.xlane.f32.xlu2 %v370_v47 }
 0x315   :  { %452 = vadd.xlane.f32.xlu2 %v451_v55 }
 0x327   :  { %v426_v26 = vpop.xlane.xlu2 %425 }
 0x328   :  { %2281 = vrcp.f32 %v426_v26 }
 0x32e   :  { %v2282_v2 = vpop.eup %2281 }
 0x32f   :  { %v429_v27 = vpop.xlane.xlu0 %428  ;;  %v2245_v59 = vpop.permute.xlu2 %2244  ;;  %v488_v11 = vmul.f32 %v2282_v2, %v2836_v3 }
 0x330   :  { %v2246_v63 = vunpack.i.l.bf16 %v2245_v59  ;;  %v2247_v61 = vunpack.i.h.bf16 %v2245_v59  ;;  %2283 = vrcp.f32 %v429_v27 }
 0x332   :  { %576 = vmatpush.msrb.mxu3 %v2246_v63 }
 0x334   :  { %577 = vmatpush.msrb.mxu3 %v2247_v61 }
 0x336   :  { %578 = vmatpush.msrb.mxu3 %v2251_v5  ;;  %v2284_v13 = vpop.eup %2283 }
 0x337   :  { %v432_v49 = vpop.xlane.xlu0 %431  ;;  %v489_v4 = vmul.f32 %v2284_v13, %v2840_v10 }
 0x338   :  { %579 = vmatpush.msrb.mxu3 %v2252_v9  ;;  %2285 = vrcp.f32 %v432_v49 }
 0x339   :  { %2126 = vmatmul.msk.f32.vlgmr.msrb.gmra.mxu3 %vm137_vm1, %v488_v11 }
 0x33e   :  { %v2286_v20 = vpop.eup %2285 }
 0x33f   :  { %v435_v32 = vpop.xlane.xlu1 %434  ;;  %v490_v21 = vmul.f32 %v2286_v20, %v2844_v15 }
 0x340   :  { %v360_v8 = vpop.xlane.xlu0 %359  ;;  %2287 = vrcp.f32 %v435_v32 }
 0x341   :  { %2127 = vmatmul.msk.f32.gmra.mxu3 %vm137_vm1, %v489_v4  ;;  %v386_v63 = vsub.f32 %v2851_v30, %v360_v8 }
 0x343   :  { %v412_v61 = vmul.f32 1.442695, %v386_v63 }
 0x346   :  { %v2288_v24 = vpop.eup %2287 }
 0x347   :  { %v491_v3 = vmul.f32 %v2288_v24, %v2853_v34 }
 0x348   :  { %v438_v12 = vpop.xlane.xlu0 %437 }
 0x349   :  { %2128 = vmatmul.msk.f32.gmra.mxu3 %vm137_vm1, %v490_v21  ;;  %2289 = vrcp.f32 %v438_v12 }
 0x34f   :  { %v2290_v35 = vpop.eup %2289 }
 0x350   :  { %v363_v31 = vpop.xlane.xlu0 %362  ;;  %v492_v39 = vmul.f32 %v2290_v35, %v2862_v45 }
 0x351   :  { %v387_v53 = vsub.f32 %v2869_v29, %v363_v31  ;;  %2129 = vmatmul.msk.f32.gmra.mxu3 %vm137_vm1, %v491_v3 }
 0x353   :  { %v414_v10 = vmul.f32 1.442695, %v387_v53 }
 0x355   :  { %2291 = vpow2.f32 %v414_v10 }
 0x358   :  { %v366_v41 = vpop.xlane.xlu0 %365 }
 0x359   :  { %v388_v15 = vsub.f32 %v2876_v57, %v366_v41  ;;  %2130 = vmatmul.msk.f32.gmra.mxu3 %vm137_vm1, %v492_v39 }
 0x35b   :  { %v2941_v43 = vpop.eup %2291  ;;  %v416_v23 = vmul.f32 1.442695, %v388_v15 }
 0x35c   :  { %v457_v34 = vsel %vm137_vm1, %v2941_v43, 0.0 }
 0x35d   :  { %2293 = vpow2.f32 %v416_v23  ;;  %458 = vadd.xlane.f32.xlu1 %v457_v34 }
 0x35f   :  { %v447_v29 = vpop.xlane.xlu1 %446 }
 0x360   :  { %v369_v2 = vpop.xlane.xlu0 %368 }
 0x361   :  { %v389_v11 = vsub.f32 %v2884_v6, %v369_v2 }
 0x363   :  { %v2945_v47 = vpop.eup %2293  ;;  %v418_v13 = vmul.f32 1.442695, %v389_v11 }
 0x364   :  { %v460_v55 = vsel %vm137_vm1, %v2945_v47, 0.0 }
 0x365   :  { %461 = vadd.xlane.f32.xlu2 %v460_v55 }
 0x367   :  { %v375_v45 = vpop.xlane.xlu1 %374 }
 0x368   :  { %v391_v57 = vsub.f32 %v2899_v14, %v375_v45  ;;  %v354_v26 = vpop.xlane.xlu2 %353 }
 0x369   :  { %v384_v27 = vsub.f32 %v2902_v18, %v354_v26 }
 0x36a   :  { %v422_v59 = vmul.f32 1.442695, %v391_v57 }
 0x36b   :  { %v408_v1 = vmul.f32 1.442695, %v384_v27 }
 0x36c   :  { %2295 = vpow2.f32 %v422_v59 }
 0x36d   :  { %2297 = vpow2.f32 %v408_v1 }
 0x370   :  { %v441_v5 = vpop.xlane.xlu2 %440 }
 0x371   :  { %2299 = vrcp.f32 %v441_v5 }
 0x372   :  { %v2952_v9 = vpop.eup %2295  ;;  %2301 = vpow2.f32 %v412_v61 }
 0x373   :  { %v2298_v49 = vpop.eup %2297  ;;  %v469_v14 = vsel %vm137_vm1, %v2952_v9, 0.0 }
 0x374   :  { %470 = vadd.xlane.f32.xlu2 %v469_v14  ;;  %v448_v18 = vsel %vm137_vm1, %v2298_v49, 0.0 }
 0x375   :  { %449 = vadd.xlane.f32.xlu0 %v448_v18 }
 0x377   :  { %v2300_v30 = vpop.eup %2299 }
 0x378   :  { %v444_v4 = vpop.xlane.xlu2 %443  ;;  %v493_v8 = vmul.f32 %v2300_v30, %v2909_v17  ;;  %v2302_v32 = vpop.eup %2301 }
 0x379   :  { %2303 = vrcp.f32 %v444_v4  ;;  %v454_v20 = vsel %vm137_vm1, %v2302_v32, 0.0 }
 0x37a   :  { %2131 = vmatmul.msk.f32.gmra.mxu3 %vm137_vm1, %v493_v8  ;;  %2305 = vpow2.f32 %v418_v13 }
 0x37b   :  { %2307 = vrcp.f32 %v447_v29 }
 0x37d   :  { %455 = vadd.xlane.f32.xlu0 %v454_v20 }
 0x37f   :  { %v2304_v6 = vpop.eup %2303 }
 0x380   :  { %v372_v21 = vpop.xlane.xlu2 %371  ;;  %v494_v12 = vmul.f32 %v2304_v6, %v2913_v37  ;;  %v2306_v24 = vpop.eup %2305  ;;  %v660_v6 = vld [vmem:[%s3854_s7 + $0x18] sm:$0xff] }
 0x381   :  { %v390_v3 = vsub.f32 %v2921_v28, %v372_v21  ;;  %v463_v17 = vsel %vm137_vm1, %v2306_v24, 0.0  ;;  %v2308_v53 = vpop.eup %2307  ;;  %685 = vmatpush.msrb.mxu1 %v660_v6 }
 0x382   :  { %2132 = vmatmul.msk.f32.gmra.mxu3 %vm137_vm1, %v494_v12  ;;  %v495_v10 = vmul.f32 %v2308_v53, %v2886_v7  ;;  %v658_v12 = vld [vmem:[%s3854_s7 + $0x8] sm:$0xff] }
 0x383   :  { %v420_v31 = vmul.f32 1.442695, %v390_v3 }
 0x385   :  { %2309 = vpow2.f32 %v420_v31  ;;  %464 = vadd.xlane.f32.xlu0 %v463_v17 }
 0x388   :  { %v453_v41 = vpop.xlane.xlu2 %452 }
 0x38a   :  { %2133 = vmatmul.msk.f32.gmra.mxu3 %vm137_vm1, %v495_v10 }
 0x38b   :  { %v2310_v35 = vpop.eup %2309 }
 0x38c   :  { %v466_v39 = vsel %vm137_vm1, %v2310_v35, 0.0 }
 0x38d   :  { %467 = vadd.xlane.f32.xlu1 %v466_v39 }
 0x3bc   :  { %v581_v18 = vpop.f32.mrf.mxu3 }
 0x3bd   :  { %v629_v10 = vmul.f32 %v581_v18, %v2657_v33 }
 0x3d0   :  { %v459_v7 = vpop.xlane.xlu1 %458 }
 0x3d8   :  { %v462_v57 = vpop.xlane.xlu2 %461 }
 0x3e7   :  { %v471_v5 = vpop.xlane.xlu2 %470 }
 0x3e8   :  { %v450_v37 = vpop.xlane.xlu0 %449 }
 0x3e9   :  { %2311 = vrcp.f32 %v450_v37 }
 0x3ea   :  { %2313 = vrcp.f32 %v453_v41 }
 0x3ef   :  { %v2312_v28 = vpop.eup %2311 }
 0x3f0   :  { %v496_v15 = vmul.f32 %v2312_v28, %v2298_v49  ;;  %v456_v23 = vpop.xlane.xlu0 %455  ;;  %v2314_v34 = vpop.eup %2313 }
 0x3f1   :  { %2315 = vrcp.f32 %v456_v23  ;;  %v497_v29 = vmul.f32 %v2314_v34, %v2925_v51 }
 0x3f2   :  { %2134 = vmatmul.msk.f32.gmra.mxu3 %vm137_vm1, %v496_v15  ;;  %2317 = vrcp.f32 %v459_v7 }
 0x3f3   :  { %2319 = vrcp.f32 %v462_v57 }
 0x3f7   :  { %v2316_v55 = vpop.eup %2315 }
 0x3f8   :  { %v498_v45 = vmul.f32 %v2316_v55, %v2302_v32  ;;  %v2318_v26 = vpop.eup %2317  ;;  %v465_v59 = vpop.xlane.xlu0 %464 }
 0x3f9   :  { %v499_v27 = vmul.f32 %v2318_v26, %v2941_v43  ;;  %v2320_v63 = vpop.eup %2319  ;;  %2321 = vrcp.f32 %v465_v59 }
 0x3fa   :  { %2135 = vmatmul.msk.f32.gmra.mxu3 %vm137_vm1, %v497_v29  ;;  %v500_v51 = vmul.f32 %v2320_v63, %v2945_v47  ;;  %v584_v47 = vpop.f32.mrf.mxu3 }
 0x3fb   :  { %v630_v34 = vmul.f32 %v584_v47, %v2666_v36 }
 0x3ff   :  { %v2322_v61 = vpop.eup %2321 }
 0x400   :  { %v468_v1 = vpop.xlane.xlu1 %467  ;;  %v501_v2 = vmul.f32 %v2322_v61, %v2306_v24  ;;  %v657_v24 = vld [vmem:[%s3854_s7] sm:$0xff] }
 0x401   :  { %2323 = vrcp.f32 %v468_v1 }
 0x402   :  { %2136 = vmatmul.msk.f32.gmra.mxu3 %vm137_vm1, %v498_v45  ;;  %2325 = vrcp.f32 %v471_v5  ;;  %v587_v30 = vpop.f32.mrf.mxu3 }
 0x403   :  { %v631_v57 = vmul.f32 %v587_v30, %v2674_v38 }
 0x407   :  { %v2324_v49 = vpop.eup %2323 }
 0x408   :  { %v502_v11 = vmul.f32 %v2324_v49, %v2310_v35  ;;  %v2326_v43 = vpop.eup %2325 }
 0x409   :  { %v503_v14 = vmul.f32 %v2326_v43, %v2952_v9  ;;  %v659_v9 = vld [vmem:[%s3854_s7 + $0x10] sm:$0xff] }
 0x40a   :  { %2137 = vmatmul.msk.f32.gmra.mxu3 %vm137_vm1, %v499_v27  ;;  %v590_v13 = vpop.f32.mrf.mxu3  ;;  %686 = vmatpush.msrb.mxu1 %v659_v9 }
 0x40b   :  { %v632_v63 = vmul.f32 %v590_v13, %v2682_v40 }
 0x40c   :  { %687 = vmatpush.msrb.mxu1 %v658_v12  ;;  %v822_v12 = vld [vmem:[%s3855_s8 + $0x10] sm:$0xff] }
 0x40e   :  { %688 = vmatpush.msrb.mxu1 %v657_v24 }
 0x412   :  { %2138 = vmatmul.msk.f32.gmra.mxu3 %vm137_vm1, %v500_v51  ;;  %v593_v4 = vpop.f32.mrf.mxu3 }
 0x413   :  { %v633_v53 = vmul.f32 %v593_v4, %v2690_v42 }
 0x415   :  { %v645_v39 = vadd.f32 %v633_v53, %v629_v10 }
 0x41a   :  { %2139 = vmatmul.msk.f32.gmra.mxu3 %vm137_vm1, %v501_v2  ;;  %v596_v8 = vpop.f32.mrf.mxu3 }
 0x41b   :  { %v634_v15 = vmul.f32 %v596_v8, %v2698_v44  ;;  %v2493_v8 = vmov 32.0  }
 0x41c   :  { %2327 = vrcp.f32 %v2493_v8 }
 0x41d   :  { %v646_v7 = vadd.f32 %v634_v15, %v630_v34 }
 0x422   :  { %2140 = vmatmul.msk.f32.gmra.mxu3 %vm137_vm1, %v502_v11  ;;  %v599_v32 = vpop.f32.mrf.mxu3 }
 0x42a   :  { %2141 = vmatmul.msk.f32.gmra.mxu3 %vm137_vm1, %v503_v14  ;;  %v602_v20 = vpop.f32.mrf.mxu3 }
 0x42b   :  { %v636_v27 = vmul.f32 %v602_v20, %v2714_v48 }
 0x475   :  { %v605_v21 = vpop.f32.mrf.mxu3 }
 0x476   :  { %v637_v35 = vmul.f32 %v605_v21, %v2722_v50  ;;  %v635_v50 = vmul.f32 %v599_v32, %v2706_v46  ;;  %v648_v46 = vadd.f32 %v636_v27, %v632_v63  ;;  %v2328_v32 = vpop.eup %2327 }
 0x477   :  { %v720_v20 = vmul.f32 32.0, %v2328_v32  ;;  %vm724_vm2 = vweird.f32 %v2328_v32 }
 0x478   :  { %v649_v41 = vadd.f32 %v645_v39, %v637_v35  ;;  %v647_v44 = vadd.f32 %v635_v50, %v631_v57 }
 0x479   :  { %v721_v6 = vsub.f32 1.0, %v720_v20  ;;  %v872_v20 = vld [vmem:[%s3856_s9 + $0x18] sm:$0xff] }
 0x47b   :  { %v722_v21 = vmul.f32 %v2328_v32, %v721_v6 }
 0x47d   :  { %v608_v3 = vpop.f32.mrf.mxu3  ;;  %v723_v9 = vadd.f32 %v2328_v32, %v722_v21 }
 0x47e   :  { %v638_v29 = vmul.f32 %v608_v3, %v2730_v52  ;;  %v821_v3 = vld [vmem:[%s3855_s8 + $0x8] sm:$0xff] }
 0x47f   :  { %v3050_v24 = vsel %vm724_vm2, %v2328_v32, %v723_v9 }
 0x480   :  { %v650_v55 = vadd.f32 %v646_v7, %v638_v29 }
 0x485   :  { %v611_v31 = vpop.f32.mrf.mxu3 }
 0x48d   :  { %v614_v17 = vpop.f32.mrf.mxu3 }
 0x495   :  { %v617_v37 = vpop.f32.mrf.mxu3 }
 0x496   :  { %v641_v28 = vmul.f32 %v617_v37, %v2754_v58  ;;  %v639_v58 = vmul.f32 %v611_v31, %v2738_v54 }
 0x498   :  { %v653_v23 = vadd.f32 %v649_v41, %v641_v28  ;;  %v651_v26 = vadd.f32 %v647_v44, %v639_v58 }
 0x49a   :  { %2142 = vmatmul.msk.f32.vlgmr.msrb.gmra.mxu1 %vm137_vm1, %v653_v23 }
 0x49d   :  { %v620_v42 = vpop.f32.mrf.mxu3 }
 0x49e   :  { %v642_v33 = vmul.f32 %v620_v42, %v2762_v60  ;;  %v640_v60 = vmul.f32 %v614_v17, %v2746_v56  ;;  %v820_v17 = vld [vmem:[%s3855_s8] sm:$0xff] }
 0x4a0   :  { %v654_v45 = vadd.f32 %v650_v55, %v642_v33  ;;  %v652_v51 = vadd.f32 %v648_v46, %v640_v60 }
 0x4a2   :  { %2143 = vmatmul.msk.f32.gmra.mxu1 %vm137_vm1, %v654_v45 }
 0x4a5   :  { %v623_v36 = vpop.f32.mrf.mxu3 }
 0x4a6   :  { %v643_v52 = vmul.f32 %v623_v36, %v2770_v62 }
 0x4a8   :  { %v655_v59 = vadd.f32 %v651_v26, %v643_v52 }
 0x4aa   :  { %2144 = vmatmul.msk.f32.gmra.mxu1 %vm137_vm1, %v655_v59  ;;  %v3075_v59 = vld [vmem:[%s3857_s10] sm:$0xf] }
 0x4ad   :  { %v626_v38 = vpop.f32.mrf.mxu3 }
 0x4ae   :  { %v644_v54 = vmul.f32 %v626_v38, %v2778_v0 }
 0x4b0   :  { %v656_v1 = vadd.f32 %v652_v51, %v644_v54 }
 0x4b2   :  { %2145 = vmatmul.msk.f32.gmra.mxu1 %vm137_vm1, %v656_v1 }
 0x517   :  { %v690_v61 = vpop.f32.mrf.mxu1 }
 0x518   :  { %v3013_v62 = vadd.f32 %v690_v61, %v2610_v16  ;;  %v3082_v61 = vperm.slane %v3075_v59, 0 }
 0x51a   :  { %v707_v48 = vsel %vm137_vm1, %v3013_v62, 0.0  ;;  %v730_v40 = vmul.f32 %v3013_v62, %v3013_v62 }
 0x51b   :  { %708 = vadd.xlane.f32.xlu0 %v707_v48  ;;  %v876_v48 = vld [vmem:[%s3856_s9 + $0x38] sm:$0xff] }
 0x51c   :  { %v734_v56 = vsel %vm137_vm1, %v730_v40, 0.0  ;;  %v875_v40 = vld [vmem:[%s3856_s9 + $0x30] sm:$0xff]  ;;  %898 = vmatpush.msra.mxu1 %v876_v48 }
 0x51d   :  { %735 = vadd.xlane.f32.xlu1 %v734_v56 }
 0x51e   :  { %899 = vmatpush.msra.mxu1 %v875_v40 }
 0x51f   :  { %v693_v2 = vpop.f32.mrf.mxu1 }
 0x520   :  { %v3021_v0 = vadd.f32 %v693_v2, %v2617_v19 }
 0x522   :  { %v710_v5 = vsel %vm137_vm1, %v3021_v0, 0.0  ;;  %v731_v16 = vmul.f32 %v3021_v0, %v3021_v0 }
 0x523   :  { %711 = vadd.xlane.f32.xlu2 %v710_v5 }
 0x524   :  { %v737_v49 = vsel %vm137_vm1, %v731_v16, 0.0 }
 0x525   :  { %738 = vadd.xlane.f32.xlu0 %v737_v49 }
 0x527   :  { %v696_v11 = vpop.f32.mrf.mxu1 }
 0x528   :  { %v3029_v43 = vadd.f32 %v696_v11, %v2624_v22  ;;  %v815_v11 = vperm.slane %v3075_v59, 1 }
 0x52a   :  { %v713_v14 = vsel %vm137_vm1, %v3029_v43, 0.0  ;;  %v732_v19 = vmul.f32 %v3029_v43, %v3029_v43 }
 0x52b   :  { %714 = vadd.xlane.f32.xlu1 %v713_v14  ;;  %v874_v14 = vld [vmem:[%s3856_s9 + $0x28] sm:$0xff] }
 0x52c   :  { %v740_v18 = vsel %vm137_vm1, %v732_v19, 0.0  ;;  %900 = vmatpush.msra.mxu1 %v874_v14 }
 0x52d   :  { %741 = vadd.xlane.f32.xlu2 %v740_v18 }
 0x52f   :  { %v699_v47 = vpop.f32.mrf.mxu1 }
 0x530   :  { %v3037_v30 = vadd.f32 %v699_v47, %v2631_v25  ;;  %v823_v25 = vld [vmem:[%s3855_s8 + $0x18] sm:$0xff] }
 0x531   :  { %848 = vmatpush.msrb.mxu0 %v823_v25  ;;  %v871_v25 = vld [vmem:[%s3856_s9 + $0x10] sm:$0xff] }
 0x532   :  { %v716_v13 = vsel %vm137_vm1, %v3037_v30, 0.0  ;;  %v733_v22 = vmul.f32 %v3037_v30, %v3037_v30 }
 0x533   :  { %717 = vadd.xlane.f32.xlu0 %v716_v13  ;;  %849 = vmatpush.msrb.mxu0 %v822_v12  ;;  %v873_v13 = vld [vmem:[%s3856_s9 + $0x20] sm:$0xff] }
 0x534   :  { %v743_v4 = vsel %vm137_vm1, %v733_v22, 0.0  ;;  %901 = vmatpush.msra.mxu1 %v873_v13 }
 0x535   :  { %744 = vadd.xlane.f32.xlu1 %v743_v4  ;;  %850 = vmatpush.msrb.mxu0 %v821_v3 }
 0x536   :  { %902 = vmatpush.msra.mxu1 %v872_v20 }
 0x537   :  { %851 = vmatpush.msrb.mxu0 %v820_v17 }
 0x538   :  { %903 = vmatpush.msra.mxu1 %v871_v25 }
 0x58e   :  { %v709_v31 = vpop.xlane.xlu0 %708 }
 0x58f   :  { %v726_v53 = vmul.f32 %v3050_v24, %v709_v31 }
 0x590   :  { %v736_v10 = vpop.xlane.xlu1 %735 }
 0x591   :  { %v750_v35 = vmul.f32 %v726_v53, %v726_v53  ;;  %v746_v39 = vmul.f32 %v736_v10, %v3050_v24  ;;  %v758_v54 = vsub.f32 %v3013_v62, %v726_v53 }
 0x593   :  { %v754_v37 = vsub.f32 %v746_v39, %v750_v35 }
 0x595   :  { %v762_v41 = vadd.f32 1e-05, %v754_v37 }
 0x596   :  { %v712_v28 = vpop.xlane.xlu2 %711 }
 0x597   :  { %2329 = vrsqrt.f32 %v762_v41  ;;  %v3061_v15 = vmul.f32 %v3050_v24, %v712_v28  ;;  %vm772_vm4 = vweird.f32 %v762_v41 }
 0x598   :  { %v739_v23 = vpop.xlane.xlu0 %738 }
 0x599   :  { %v751_v34 = vmul.f32 %v3061_v15, %v3061_v15  ;;  %v747_v29 = vmul.f32 %v739_v23, %v3050_v24  ;;  %v759_v9 = vsub.f32 %v3021_v0, %v3061_v15 }
 0x59b   :  { %v755_v7 = vsub.f32 %v747_v29, %v751_v34 }
 0x59d   :  { %v2330_v42 = vpop.eup %2329  ;;  %v763_v55 = vadd.f32 1e-05, %v755_v7 }
 0x59e   :  { %v767_v33 = vmul.f32 %v2330_v42, %v762_v41  ;;  %v715_v50 = vpop.xlane.xlu1 %714  ;;  %vm773_vm3 = vweird.f32 %v2330_v42 }
 0x59f   :  { %2331 = vrsqrt.f32 %v763_v55  ;;  %v3067_v45 = vmul.f32 %v3050_v24, %v715_v50  ;;  %vm774_vm5 = vmor %vm772_vm4, %vm773_vm3  ;;  %vm782_vm7 = vweird.f32 %v763_v55 }
 0x5a0   :  { %v768_v57 = vmul.f32 %v2330_v42, %v767_v33  ;;  %v742_v58 = vpop.xlane.xlu2 %741 }
 0x5a1   :  { %v752_v44 = vmul.f32 %v3067_v45, %v3067_v45  ;;  %v748_v36 = vmul.f32 %v742_v58, %v3050_v24  ;;  %v760_v41 = vsub.f32 %v3029_v43, %v3067_v45  ;;  %v870_v58 = vld [vmem:[%s3856_s9 + $0x8] sm:$0xff] }
 0x5a2   :  { %v769_v26 = vmul.f32 0.5, %v768_v57  ;;  %904 = vmatpush.msra.mxu1 %v870_v58 }
 0x5a3   :  { %v756_v52 = vsub.f32 %v748_v36, %v752_v44  ;;  %v869_v44 = vld [vmem:[%s3856_s9] sm:$0xff] }
 0x5a4   :  { %v770_v27 = vsub.f32 1.5, %v769_v26  ;;  %905 = vmatpush.msra.mxu1 %v869_v44 }
 0x5a5   :  { %v2332_v63 = vpop.eup %2331  ;;  %v764_v60 = vadd.f32 1e-05, %v756_v52 }
 0x5a6   :  { %v771_v46 = vmul.f32 %v2330_v42, %v770_v27  ;;  %v777_v38 = vmul.f32 %v2332_v63, %v763_v55  ;;  %v718_v51 = vpop.xlane.xlu0 %717  ;;  %vm783_vm6 = vweird.f32 %v2332_v63 }
 0x5a7   :  { %2333 = vrsqrt.f32 %v764_v60  ;;  %v3079_v1 = vmul.f32 %v3050_v24, %v718_v51  ;;  %vm784_vm8 = vmor %vm782_vm7, %vm783_vm6  ;;  %vm792_vm10 = vweird.f32 %v764_v60 }
 0x5a8   :  { %v775_v56 = vsel %vm774_vm5, %v2330_v42, %v771_v46  ;;  %v778_v2 = vmul.f32 %v2332_v63, %v777_v38  ;;  %v745_v5 = vpop.xlane.xlu1 %744 }
 0x5a9   :  { %v753_v62 = vmul.f32 %v3079_v1, %v3079_v1  ;;  %v749_v16 = vmul.f32 %v745_v5, %v3050_v24  ;;  %v806_v49 = vmul.f32 %v775_v56, %v758_v54  ;;  %v761_v33 = vsub.f32 %v3037_v30, %v3079_v1 }
 0x5aa   :  { %v779_v19 = vmul.f32 0.5, %v778_v2 }
 0x5ab   :  { %v757_v18 = vsub.f32 %v749_v16, %v753_v62  ;;  %v811_v47 = vmul.f32 %v3082_v61, %v806_v49 }
 0x5ac   :  { %v780_v22 = vsub.f32 1.5, %v779_v19 }
 0x5ad   :  { %v2334_v4 = vpop.eup %2333  ;;  %v765_v8 = vadd.f32 1e-05, %v757_v18  ;;  %v3101_v32 = vadd.f32 %v815_v11, %v811_v47 }
 0x5ae   :  { %v781_v6 = vmul.f32 %v2332_v63, %v780_v22  ;;  %v787_v21 = vmul.f32 %v2334_v4, %v764_v60  ;;  %vm793_vm9 = vweird.f32 %v2334_v4 }
 0x5af   :  { %2335 = vrsqrt.f32 %v765_v8  ;;  %2146 = vmatmul.msk.f32.vlgmr.msrb.gmra.mxu0 %vm137_vm1, %v3101_v32  ;;  %vm794_vm11 = vmor %vm792_vm10, %vm793_vm9  ;;  %vm802_vm13 = vweird.f32 %v765_v8 }
 0x5b0   :  { %v788_v12 = vmul.f32 %v2334_v4, %v787_v21  ;;  %v785_v3 = vsel %vm784_vm8, %v2332_v63, %v781_v6  ;;  %v2154_v6 = vld [vmem:[%s3853_s6 + $0x20] sm:$0xff] }
 0x5b1   :  { %v807_v31 = vmul.f32 %v785_v3, %v759_v9 }
 0x5b2   :  { %v789_v17 = vmul.f32 0.5, %v788_v12 }
 0x5b3   :  { %v812_v53 = vmul.f32 %v3082_v61, %v807_v31 }
 0x5b4   :  { %v790_v10 = vsub.f32 1.5, %v789_v17 }
 0x5b5   :  { %v2336_v0 = vpop.eup %2335  ;;  %v817_v35 = vadd.f32 %v815_v11, %v812_v53 }
 0x5b6   :  { %v791_v39 = vmul.f32 %v2334_v4, %v790_v10  ;;  %v797_v37 = vmul.f32 %v2336_v0, %v765_v8  ;;  %vm803_vm12 = vweird.f32 %v2336_v0  ;;  %v2156_v8 = vld [vmem:[%s3853_s6 + $0x30] sm:$0xff] }
 0x5b7   :  { %2147 = vmatmul.msk.f32.gmra.mxu0 %vm137_vm1, %v817_v35  ;;  %vm804_vm14 = vmor %vm802_vm13, %vm803_vm12 }
 0x5b8   :  { %v798_v28 = vmul.f32 %v2336_v0, %v797_v37  ;;  %v795_v15 = vsel %vm794_vm11, %v2334_v4, %v791_v39  ;;  %v2157_v4 = vld [vmem:[%s3853_s6 + $0x38] sm:$0xff] }
 0x5b9   :  { %v808_v23 = vmul.f32 %v795_v15, %v760_v41  ;;  %1058 = vmatpush.msra.mxu0 %v2157_v4 }
 0x5ba   :  { %v799_v34 = vmul.f32 0.5, %v798_v28 }
 0x5bb   :  { %v813_v29 = vmul.f32 %v3082_v61, %v808_v23  ;;  %1059 = vmatpush.msra.mxu0 %v2156_v8 }
 0x5bc   :  { %v800_v7 = vsub.f32 1.5, %v799_v34 }
 0x5bd   :  { %v818_v42 = vadd.f32 %v815_v11, %v813_v29 }
 0x5be   :  { %v801_v55 = vmul.f32 %v2336_v0, %v800_v7 }
 0x5bf   :  { %2148 = vmatmul.msk.f32.gmra.mxu0 %vm137_vm1, %v818_v42 }
 0x5c0   :  { %v805_v43 = vsel %vm804_vm14, %v2336_v0, %v801_v55 }
 0x5c1   :  { %v809_v50 = vmul.f32 %v805_v43, %v761_v33 }
 0x5c3   :  { %v814_v45 = vmul.f32 %v3082_v61, %v809_v50 }
 0x5c5   :  { %v819_v57 = vadd.f32 %v815_v11, %v814_v45 }
 0x5c7   :  { %2149 = vmatmul.msk.f32.gmra.mxu0 %vm137_vm1, %v819_v57 }
 0x62c   :  { %v853_v30 = vpop.f32.mrf.mxu0 }
 0x62d   :  { %v865_v36 = vmax.f32 %v853_v30, 0.0 }
 0x62f   :  { %2150 = vmatmul.msk.f32.vlgmr.msra.gmra.mxu1 %vm877_vm15, %v865_v36  ;;  %v1019_v36 = vperm.slane %v3075_v59, 2 }
 0x634   :  { %v856_v26 = vpop.f32.mrf.mxu0 }
 0x635   :  { %v866_v52 = vmax.f32 %v856_v26, 0.0 }
 0x637   :  { %2151 = vmatmul.msk.f32.gmra.mxu1 %vm877_vm15, %v866_v52 }
 0x63c   :  { %v859_v27 = vpop.f32.mrf.mxu0 }
 0x63d   :  { %v867_v63 = vmax.f32 %v859_v27, 0.0 }
 0x63f   :  { %2152 = vmatmul.msk.f32.gmra.mxu1 %vm877_vm15, %v867_v63 }
 0x644   :  { %v862_v60 = vpop.f32.mrf.mxu0 }
 0x645   :  { %v868_v46 = vmax.f32 %v862_v60, 0.0 }
 0x647   :  { %2153 = vmatmul.msk.f32.gmra.mxu1 %vm877_vm15, %v868_v46 }
 0x6ac   :  { %v907_v38 = vpop.f32.mrf.mxu1 }
 0x6ad   :  { %v3134_v51 = vadd.f32 %v907_v38, %v3101_v32  ;;  %v2155_v32 = vld [vmem:[%s3853_s6 + $0x28] sm:$0xff] }
 0x6ae   :  { %1060 = vmatpush.msra.mxu0 %v2155_v32 }
 0x6af   :  { %v923_v54 = vsel %vm137_vm1, %v3134_v51, 0.0  ;;  %v939_v1 = vmul.f32 %v3134_v51, %v3134_v51 }
 0x6b0   :  { %924 = vadd.xlane.f32.xlu2 %v923_v54  ;;  %1061 = vmatpush.msra.mxu0 %v2154_v6  ;;  %v1024_v54 = vperm.slane %v3075_v59, 3 }
 0x6b1   :  { %v943_v61 = vsel %vm137_vm1, %v939_v1, 0.0 }
 0x6b2   :  { %944 = vadd.xlane.f32.xlu0 %v943_v61 }
 0x6b4   :  { %v910_v48 = vpop.f32.mrf.mxu1 }
 0x6b5   :  { %v3141_v40 = vadd.f32 %v910_v48, %v817_v35 }
 0x6b7   :  { %v926_v56 = vsel %vm137_vm1, %v3141_v40, 0.0  ;;  %v940_v2 = vmul.f32 %v3141_v40, %v3141_v40 }
 0x6b8   :  { %927 = vadd.xlane.f32.xlu1 %v926_v56 }
 0x6b9   :  { %v946_v5 = vsel %vm137_vm1, %v940_v2, 0.0 }
 0x6ba   :  { %947 = vadd.xlane.f32.xlu2 %v946_v5 }
 0x6bc   :  { %v913_v62 = vpop.f32.mrf.mxu1 }
 0x6bd   :  { %v3148_v16 = vadd.f32 %v913_v62, %v818_v42 }
 0x6bf   :  { %v929_v49 = vsel %vm137_vm1, %v3148_v16, 0.0  ;;  %v941_v11 = vmul.f32 %v3148_v16, %v3148_v16 }
 0x6c0   :  { %930 = vadd.xlane.f32.xlu0 %v929_v49 }
 0x6c1   :  { %v949_v14 = vsel %vm137_vm1, %v941_v11, 0.0 }
 0x6c2   :  { %950 = vadd.xlane.f32.xlu1 %v949_v14 }
 0x6c4   :  { %v916_v19 = vpop.f32.mrf.mxu1 }
 0x6c5   :  { %v3155_v18 = vadd.f32 %v916_v19, %v819_v57 }
 0x6c7   :  { %v932_v47 = vsel %vm137_vm1, %v3155_v18, 0.0  ;;  %v942_v13 = vmul.f32 %v3155_v18, %v3155_v18 }
 0x6c8   :  { %933 = vadd.xlane.f32.xlu2 %v932_v47 }
 0x6c9   :  { %v952_v22 = vsel %vm137_vm1, %v942_v13, 0.0 }
 0x6ca   :  { %953 = vadd.xlane.f32.xlu0 %v952_v22 }
 0x723   :  { %v925_v20 = vpop.xlane.xlu2 %924 }
 0x724   :  { %v935_v21 = vmul.f32 %v925_v20, %v3050_v24 }
 0x725   :  { %v945_v9 = vpop.xlane.xlu0 %944 }
 0x726   :  { %v959_v25 = vmul.f32 %v935_v21, %v935_v21  ;;  %v955_v12 = vmul.f32 %v945_v9, %v3050_v24  ;;  %v967_v30 = vsub.f32 %v3134_v51, %v935_v21 }
 0x728   :  { %v963_v3 = vsub.f32 %v955_v12, %v959_v25 }
 0x72a   :  { %v971_v31 = vadd.f32 1e-05, %v963_v3 }
 0x72b   :  { %v928_v17 = vpop.xlane.xlu1 %927 }
 0x72c   :  { %2337 = vrsqrt.f32 %v971_v31  ;;  %v936_v53 = vmul.f32 %v928_v17, %v3050_v24  ;;  %vm981_vm2 = vweird.f32 %v971_v31 }
 0x72d   :  { %v948_v10 = vpop.xlane.xlu2 %947 }
 0x72e   :  { %v960_v0 = vmul.f32 %v936_v53, %v936_v53  ;;  %v956_v35 = vmul.f32 %v948_v10, %v3050_v24  ;;  %v968_v11 = vsub.f32 %v3141_v40, %v936_v53 }
 0x730   :  { %v964_v39 = vsub.f32 %v956_v35, %v960_v0 }
 0x732   :  { %v2338_v37 = vpop.eup %2337  ;;  %v972_v41 = vadd.f32 1e-05, %v964_v39 }
 0x733   :  { %v976_v28 = vmul.f32 %v2338_v37, %v971_v31  ;;  %v931_v15 = vpop.xlane.xlu0 %930  ;;  %vm982_vm0 = vweird.f32 %v2338_v37 }
 0x734   :  { %2339 = vrsqrt.f32 %v972_v41  ;;  %v937_v23 = vmul.f32 %v931_v15, %v3050_v24  ;;  %vm983_vm3 = vmor %vm981_vm2, %vm982_vm0  ;;  %vm991_vm5 = vweird.f32 %v972_v41 }
 0x735   :  { %v977_v34 = vmul.f32 %v2338_v37, %v976_v28  ;;  %v951_v29 = vpop.xlane.xlu1 %950 }
 0x736   :  { %v961_v7 = vmul.f32 %v937_v23, %v937_v23  ;;  %v957_v42 = vmul.f32 %v951_v29, %v3050_v24  ;;  %v969_v40 = vsub.f32 %v3148_v16, %v937_v23 }
 0x737   :  { %v978_v55 = vmul.f32 0.5, %v977_v34 }
 0x738   :  { %v965_v33 = vsub.f32 %v957_v42, %v961_v7  ;;  %v3229_v7 = vld [vmem:[%s3850_s3] sm:$0xff] }
 0x739   :  { %v979_v43 = vsub.f32 1.5, %v978_v55  ;;  %v3237_v55 = vld [vmem:[%s3850_s3 + $0x8] sm:$0xff] }
 0x73a   :  { %v2340_v50 = vpop.eup %2339  ;;  %v973_v45 = vadd.f32 1e-05, %v965_v33 }
 0x73b   :  { %v980_v57 = vmul.f32 %v2338_v37, %v979_v43  ;;  %v986_v58 = vmul.f32 %v2340_v50, %v972_v41  ;;  %v934_v44 = vpop.xlane.xlu2 %933  ;;  %vm992_vm4 = vweird.f32 %v2340_v50  ;;  %v3245_v43 = vld [vmem:[%s3850_s3 + $0x10] sm:$0xff] }
 0x73c   :  { %2341 = vrsqrt.f32 %v973_v45  ;;  %v938_v26 = vmul.f32 %v934_v44, %v3050_v24  ;;  %vm993_vm6 = vmor %vm991_vm5, %vm992_vm4  ;;  %vm1001_vm8 = vweird.f32 %v973_v45 }
 0x73d   :  { %v984_v52 = vsel %vm983_vm3, %v2338_v37, %v980_v57  ;;  %v987_v27 = vmul.f32 %v2340_v50, %v986_v58  ;;  %v954_v63 = vpop.xlane.xlu0 %953  ;;  %v3261_v58 = vld [vmem:[%s3850_s3 + $0x20] sm:$0xff] }
 0x73e   :  { %v1015_v60 = vmul.f32 %v984_v52, %v967_v30  ;;  %v962_v46 = vmul.f32 %v938_v26, %v938_v26  ;;  %v958_v38 = vmul.f32 %v954_v63, %v3050_v24  ;;  %v970_v53 = vsub.f32 %v3155_v18, %v938_v26  ;;  %v3269_v30 = vld [vmem:[%s3850_s3 + $0x28] sm:$0xff]  ;;  %v3277_v26 = vld [vmem:[%s3850_s3 + $0x30] sm:$0xff] }
 0x73f   :  { %v988_v1 = vmul.f32 0.5, %v987_v27  ;;  %v3285_v27 = vld [vmem:[%s3850_s3 + $0x38] sm:$0xff] }
 0x740   :  { %v1020_v61 = vmul.f32 %v1019_v36, %v1015_v60  ;;  %v966_v48 = vsub.f32 %v958_v38, %v962_v46  ;;  %v3293_v60 = vld [vmem:[%s3850_s3 + $0x40] sm:$0xff]  ;;  %v3301_v38 = vld [vmem:[%s3850_s3 + $0x48] sm:$0xff] }
 0x741   :  { %v989_v56 = vsub.f32 1.5, %v988_v1  ;;  %v3309_v1 = vld [vmem:[%s3850_s3 + $0x50] sm:$0xff] }
 0x742   :  { %v2342_v51 = vpop.eup %2341  ;;  %v974_v2 = vadd.f32 1e-05, %v966_v48  ;;  %v3185_v5 = vadd.f32 %v1024_v54, %v1020_v61  ;;  %v3317_v48 = vld [vmem:[%s3850_s3 + $0x58] sm:$0xff] }
 0x743   :  { %v990_v62 = vmul.f32 %v2340_v50, %v989_v56  ;;  %v996_v49 = vmul.f32 %v2342_v51, %v973_v45  ;;  %vm1002_vm7 = vweird.f32 %v2342_v51  ;;  %v3253_v45 = vld [vmem:[%s3850_s3 + $0x18] sm:$0xff] }
 0x744   :  { %2343 = vrsqrt.f32 %v974_v2  ;;  %2158 = vmatmul.msk.f32.vlgmr.msra.gmra.mxu0 %vm137_vm1, %v3185_v5  ;;  %vm1003_vm9 = vmor %vm1001_vm8, %vm1002_vm7  ;;  %vm1011_vm11 = vweird.f32 %v974_v2 }
 0x745   :  { %v997_v59 = vmul.f32 %v2342_v51, %v996_v49  ;;  %v994_v14 = vsel %vm993_vm6, %v2340_v50, %v990_v62  ;;  %v3333_v62 = vld [vmem:[%s3850_s3 + $0x68] sm:$0xff] }
 0x746   :  { %v1016_v19 = vmul.f32 %v994_v14, %v968_v11  ;;  %v3341_v11 = vld [vmem:[%s3850_s3 + $0x70] sm:$0xff]  ;;  %v3349_v14 = vld [vmem:[%s3850_s3 + $0x78] sm:$0xff] }
 0x747   :  { %v998_v47 = vmul.f32 0.5, %v997_v59 }
 0x748   :  { %v1021_v13 = vmul.f32 %v1019_v36, %v1016_v19 }
 0x749   :  { %v999_v22 = vsub.f32 1.5, %v998_v47 }
 0x74a   :  { %v2344_v4 = vpop.eup %2343  ;;  %v3190_v8 = vadd.f32 %v1024_v54, %v1021_v13  ;;  %v2449_v13 = vld [vmem:[%s3849_s2] sm:$0xff] }
 0x74b   :  { %v1000_v32 = vmul.f32 %v2342_v51, %v999_v22  ;;  %v1006_v20 = vmul.f32 %v2344_v4, %v974_v2  ;;  %vm1012_vm10 = vweird.f32 %v2344_v4 }
 0x74c   :  { %2159 = vmatmul.msk.f32.gmra.mxu0 %vm137_vm1, %v3190_v8  ;;  %vm1013_vm12 = vmor %vm1011_vm11, %vm1012_vm10 }
 0x74d   :  { %v1007_v6 = vmul.f32 %v2344_v4, %v1006_v20  ;;  %v1004_v21 = vsel %vm1003_vm9, %v2342_v51, %v1000_v32  ;;  %v3325_v51 = vld [vmem:[%s3850_s3 + $0x60] sm:$0xff]  ;;  %v2450_v20 = vld [vmem:[%s3849_s2 + $0x8] sm:$0xff] }
 0x74e   :  { %v1017_v9 = vmul.f32 %v1004_v21, %v969_v40 }
 0x74f   :  { %v1008_v25 = vmul.f32 0.5, %v1007_v6 }
 0x750   :  { %v1022_v12 = vmul.f32 %v1019_v36, %v1017_v9  ;;  %v2451_v9 = vld [vmem:[%s3849_s2 + $0x10] sm:$0xff] }
 0x751   :  { %v1009_v3 = vsub.f32 1.5, %v1008_v25 }
 0x752   :  { %v3195_v31 = vadd.f32 %v1024_v54, %v1022_v12 }
 0x753   :  { %v1010_v17 = vmul.f32 %v2344_v4, %v1009_v3 }
 0x754   :  { %2160 = vmatmul.msk.f32.gmra.mxu0 %vm137_vm1, %v3195_v31 }
 0x755   :  { %v1014_v16 = vsel %vm1013_vm12, %v2344_v4, %v1010_v17  ;;  %v2452_v17 = vld [vmem:[%s3849_s2 + $0x18] sm:$0xff] }
 0x756   :  { %v1018_v10 = vmul.f32 %v1014_v16, %v970_v53 }
 0x758   :  { %v1023_v0 = vmul.f32 %v1019_v36, %v1018_v10 }
 0x75a   :  { %v3200_v35 = vadd.f32 %v1024_v54, %v1023_v0  ;;  %v2453_v0 = vld [vmem:[%s3849_s2 + $0x20] sm:$0xff] }
 0x75c   :  { %2161 = vmatmul.msk.f32.gmra.mxu0 %vm137_vm1, %v3200_v35 }
 0x7c1   :  { %v3204_v39 = vpop.f32.mrf.mxu0 }
 0x7c2   :  { %v1075_v42 = vmul.f32 %v3229_v7, %v3204_v39  ;;  %v1079_v44 = vmul.f32 %v3261_v58, %v3204_v39  ;;  %v1083_v46 = vmul.f32 %v3293_v60, %v3204_v39  ;;  %v1087_v2 = vmul.f32 %v3325_v51, %v3204_v39 }
 0x7c9   :  { %v3206_v37 = vpop.f32.mrf.mxu0 }
 0x7ca   :  { %1097 = vrot.lane.b32.xlu0 %v3206_v37, %s2491_s25  ;;  %v2258_v18 = vpack.i.bf16 %v3204_v39, %v3206_v37  ;;  %v1076_v33 = vmul.f32 %v3237_v55, %v3206_v37  ;;  %v1080_v36 = vmul.f32 %v3269_v30, %v3206_v37  ;;  %v1084_v54 = vmul.f32 %v3301_v38, %v3206_v37 }
 0x7cb   :  { %v1088_v49 = vmul.f32 %v3333_v62, %v3206_v37 }
 0x7d1   :  { %v3212_v41 = vpop.f32.mrf.mxu0 }
 0x7d2   :  { %1095 = vrot.lane.b32.xlu0 %v3204_v39, %s2491_s25  ;;  %1099 = vrot.lane.b32.xlu2 %v3212_v41, %s2491_s25  ;;  %v1077_v50 = vmul.f32 %v3245_v43, %v3212_v41  ;;  %v1081_v52 = vmul.f32 %v3277_v26, %v3212_v41  ;;  %v1085_v61 = vmul.f32 %v3309_v1, %v3212_v41 }
 0x7d3   :  { %v1089_v59 = vmul.f32 %v3341_v11, %v3212_v41 }
 0x7d9   :  { %v3218_v28 = vpop.f32.mrf.mxu0 }
 0x7da   :  { %1101 = vrot.lane.b32.xlu1 %v3218_v28, %s2491_s25  ;;  %v1078_v57 = vmul.f32 %v3253_v45, %v3218_v28  ;;  %v1082_v63 = vmul.f32 %v3285_v27, %v3218_v28  ;;  %v1086_v56 = vmul.f32 %v3317_v48, %v3218_v28  ;;  %v1090_v19 = vmul.f32 %v3349_v14, %v3218_v28 }
 0x82c   :  { %v1100_v34 = vpop.permute.xlu2 %1099 }
 0x83c   :  { %v1098_v23 = vpop.permute.xlu0 %1097 }
 0x844   :  { %v1096_v29 = vpop.permute.xlu0 %1095 }
 0x84c   :  { %v1102_v15 = vpop.permute.xlu1 %1101 }
 0x84d   :  { %2162 = vmatpush.xpose.msk.msrb.mxu1 %vm137_vm1, %v1102_v15 }
 0x851   :  { %2163 = vmatpush.xpose.msk.msrb.mxu1 %vm137_vm1, %v1100_v34 }
 0x855   :  { %2164 = vmatpush.xpose.msk.msrb.mxu1 %vm137_vm1, %v1098_v23 }
 0x859   :  { %2165 = vmatpush.xpose.msk.msrb.mxu1 %vm137_vm1, %v1096_v29  ;;  %v2454_v29 = vld [vmem:[%s3849_s2 + $0x28] sm:$0xff] }
 0x85c   :  { %2166 = vmatmul.msk.f32.vlgmr.msrb.gmra.mxu1 %vm137_vm1, %v1075_v42 }
 0x864   :  { %2167 = vmatmul.msk.f32.gmra.mxu1 %vm137_vm1, %v1076_v33 }
 0x86c   :  { %2168 = vmatmul.msk.f32.gmra.mxu1 %vm137_vm1, %v1077_v50 }
 0x874   :  { %2169 = vmatmul.msk.f32.gmra.mxu1 %vm137_vm1, %v1078_v57  ;;  %v2455_v57 = vld [vmem:[%s3849_s2 + $0x30] sm:$0xff] }
 0x87c   :  { %2170 = vmatmul.msk.f32.gmra.mxu1 %vm137_vm1, %v1079_v44 }
 0x884   :  { %2171 = vmatmul.msk.f32.gmra.mxu1 %vm137_vm1, %v1080_v36 }
 0x88c   :  { %2172 = vmatmul.msk.f32.gmra.mxu1 %vm137_vm1, %v1081_v52 }
 0x894   :  { %2173 = vmatmul.msk.f32.gmra.mxu1 %vm137_vm1, %v1082_v63  ;;  %v2456_v63 = vld [vmem:[%s3849_s2 + $0x38] sm:$0xff] }
 0x89c   :  { %2174 = vmatmul.msk.f32.gmra.mxu1 %vm137_vm1, %v1083_v46 }
 0x8a4   :  { %2175 = vmatmul.msk.f32.gmra.mxu1 %vm137_vm1, %v1084_v54 }
 0x8ac   :  { %2176 = vmatmul.msk.f32.gmra.mxu1 %vm137_vm1, %v1085_v61  ;;  %v2253_v61 = vpack.i.bf16 %v3212_v41, %v3218_v28 }
 0x8b4   :  { %2177 = vmatmul.msk.f32.gmra.mxu1 %vm137_vm1, %v1086_v56 }
 0x8bc   :  { %2178 = vmatmul.msk.f32.gmra.mxu1 %vm137_vm1, %v1087_v2  ;;  %v2457_v2 = vld [vmem:[%s3849_s2 + $0x40] sm:$0xff] }
 0x8c4   :  { %2179 = vmatmul.msk.f32.gmra.mxu1 %vm137_vm1, %v1088_v49 }
 0x8cc   :  { %2180 = vmatmul.msk.f32.gmra.mxu1 %vm137_vm1, %v1089_v59 }
 0x8d4   :  { %2181 = vmatmul.msk.f32.gmra.mxu1 %vm137_vm1, %v1090_v19 }
 0x8d9   :  { %v1176_v47 = vpop.f32.mrf.mxu1 }
 0x8da   :  { %v1177_v22 = vadd.f32 %v2449_v13, %v1176_v47 }
 0x8dc   :  { %v1224_v4 = vsel %vm137_vm1, %v1177_v22, -inf }
 0x8dd   :  { %1225 = vmax.xlane.f32.xlu1 %v1224_v4 }
 0x8e1   :  { %v1179_v32 = vpop.f32.mrf.mxu1 }
 0x8e2   :  { %v1180_v40 = vadd.f32 %v2450_v20, %v1179_v32 }
 0x8e4   :  { %v1227_v6 = vsel %vm137_vm1, %v1180_v40, -inf }
 0x8e5   :  { %1228 = vmax.xlane.f32.xlu2 %v1227_v6 }
 0x8e9   :  { %v1182_v21 = vpop.f32.mrf.mxu1 }
 0x8ea   :  { %v1183_v25 = vadd.f32 %v2451_v9, %v1182_v21 }
 0x8ec   :  { %v1230_v12 = vsel %vm137_vm1, %v1183_v25, -inf }
 0x8ed   :  { %1231 = vmax.xlane.f32.xlu0 %v1230_v12 }
 0x8f1   :  { %v1185_v3 = vpop.f32.mrf.mxu1 }
 0x8f2   :  { %v3369_v53 = vadd.f32 %v2452_v17, %v1185_v3 }
 0x8f4   :  { %v1233_v16 = vsel %vm137_vm1, %v3369_v53, -inf }
 0x8f5   :  { %1234 = vmax.xlane.f32.xlu1 %v1233_v16 }
 0x8f9   :  { %v1188_v10 = vpop.f32.mrf.mxu1 }
 0x8fa   :  { %v3376_v15 = vadd.f32 %v2453_v0, %v1188_v10 }
 0x8fc   :  { %v1236_v23 = vsel %vm137_vm1, %v3376_v15, -inf }
 0x8fd   :  { %1237 = vmax.xlane.f32.xlu2 %v1236_v23 }
 0x901   :  { %v1191_v34 = vpop.f32.mrf.mxu1 }
 0x902   :  { %v3383_v42 = vadd.f32 %v2454_v29, %v1191_v34  ;;  %v2459_v29 = vld [vmem:[%s3849_s2 + $0x50] sm:$0xff] }
 0x904   :  { %v1239_v33 = vsel %vm137_vm1, %v3383_v42, -inf }
 0x905   :  { %1240 = vmax.xlane.f32.xlu0 %v1239_v33 }
 0x909   :  { %v1194_v50 = vpop.f32.mrf.mxu1 }
 0x90a   :  { %v3390_v44 = vadd.f32 %v2455_v57, %v1194_v50  ;;  %v2460_v50 = vld [vmem:[%s3849_s2 + $0x60] sm:$0xff] }
 0x90c   :  { %v1242_v36 = vsel %vm137_vm1, %v3390_v44, -inf }
 0x90d   :  { %1243 = vmax.xlane.f32.xlu1 %v1242_v36 }
 0x911   :  { %v1197_v52 = vpop.f32.mrf.mxu1 }
 0x912   :  { %v3397_v46 = vadd.f32 %v2456_v63, %v1197_v52 }
 0x914   :  { %v1245_v54 = vsel %vm137_vm1, %v3397_v46, -inf }
 0x915   :  { %1246 = vmax.xlane.f32.xlu1 %v1245_v54 }
 0x919   :  { %v1200_v56 = vpop.f32.mrf.mxu1  ;;  %2254 = vrot.lane.b32.xlu0 %v2253_v61, %s2492_s15 }
 0x91a   :  { %v3407_v49 = vadd.f32 %v2457_v2, %v1200_v56  ;;  %v2461_v56 = vld [vmem:[%s3849_s2 + $0x58] sm:$0xff] }
 0x91c   :  { %v1248_v59 = vsel %vm137_vm1, %v3407_v49, -inf }
 0x91d   :  { %1249 = vmax.xlane.f32.xlu1 %v1248_v59 }
 0x921   :  { %v1203_v19 = vpop.f32.mrf.mxu1 }
 0x929   :  { %v1206_v41 = vpop.f32.mrf.mxu1 }
 0x92a   :  { %v3433_v33 = vadd.f32 %v2459_v29, %v1206_v41 }
 0x92c   :  { %v1254_v54 = vsel %vm137_vm1, %v3433_v33, -inf }
 0x931   :  { %v1209_v17 = vpop.f32.mrf.mxu1 }
 0x932   :  { %v3452_v2 = vadd.f32 %v2461_v56, %v1209_v17 }
 0x939   :  { %v1212_v34 = vpop.f32.mrf.mxu1 }
 0x93a   :  { %v3438_v57 = vadd.f32 %v2460_v50, %v1212_v34 }
 0x93c   :  { %v1260_v63 = vsel %vm137_vm1, %v3438_v57, -inf }
 0x941   :  { %v1215_v37 = vpop.f32.mrf.mxu1 }
 0x950   :  { %v1226_v47 = vpop.xlane.xlu1 %1225 }
 0x951   :  { %v1272_v13 = vsub.f32 %v1177_v22, %v1226_v47  ;;  %v1257_v47 = vsel %vm137_vm1, %v3452_v2, -inf }
 0x953   :  { %v1288_v4 = vmul.f32 1.442695, %v1272_v13 }
 0x955   :  { %2345 = vpow2.f32 %v1288_v4 }
 0x958   :  { %v1229_v32 = vpop.xlane.xlu2 %1228 }
 0x959   :  { %v1273_v28 = vsub.f32 %v1180_v40, %v1229_v32  ;;  %v2458_v40 = vld [vmem:[%s3849_s2 + $0x48] sm:$0xff] }
 0x95a   :  { %v3422_v10 = vadd.f32 %v2458_v40, %v1203_v19 }
 0x95b   :  { %v3411_v20 = vpop.eup %2345  ;;  %v1290_v6 = vmul.f32 1.442695, %v1273_v28 }
 0x95c   :  { %v1320_v21 = vsel %vm137_vm1, %v3411_v20, 0.0  ;;  %v1251_v23 = vsel %vm137_vm1, %v3422_v10, -inf }
 0x95d   :  { %2347 = vpow2.f32 %v1290_v6  ;;  %1321 = vadd.xlane.f32.xlu2 %v1320_v21  ;;  %v1218_v21 = vpop.f32.mrf.mxu1 }
 0x960   :  { %v1232_v9 = vpop.xlane.xlu0 %1231 }
 0x961   :  { %v1274_v12 = vsub.f32 %v1183_v25, %v1232_v9 }
 0x963   :  { %v3415_v3 = vpop.eup %2347  ;;  %v1292_v16 = vmul.f32 1.442695, %v1274_v12 }
 0x964   :  { %v1323_v22 = vsel %vm137_vm1, %v3415_v3, 0.0 }
 0x965   :  { %2349 = vpow2.f32 %v1292_v16  ;;  %1324 = vadd.xlane.f32.xlu1 %v1323_v22  ;;  %v1221_v29 = vpop.f32.mrf.mxu1 }
 0x96b   :  { %v3424_v0 = vpop.eup %2349 }
 0x96c   :  { %v1326_v25 = vsel %vm137_vm1, %v3424_v0, 0.0 }
 0x96d   :  { %1327 = vadd.xlane.f32.xlu0 %v1326_v25  ;;  %1252 = vmax.xlane.f32.xlu1 %v1251_v23 }
 0x970   :  { %v1238_v36 = vpop.xlane.xlu2 %1237 }
 0x971   :  { %v1276_v52 = vsub.f32 %v3376_v15, %v1238_v36  ;;  %v1235_v15 = vpop.xlane.xlu1 %1234  ;;  %v2463_v36 = vld [vmem:[%s3849_s2 + $0x78] sm:$0xff] }
 0x973   :  { %v1296_v61 = vmul.f32 1.442695, %v1276_v52  ;;  %v3484_v52 = vadd.f32 %v2463_v36, %v1221_v29 }
 0x975   :  { %1261 = vmax.xlane.f32.xlu0 %v1260_v63  ;;  %1255 = vmax.xlane.f32.xlu1 %v1254_v54  ;;  %2351 = vpow2.f32 %v1296_v61  ;;  %v1269_v56 = vsel %vm137_vm1, %v3484_v52, -inf }
 0x976   :  { %2259 = vrot.lane.b32.xlu2 %v2258_v18, %s2492_s15 }
 0x978   :  { %v1241_v59 = vpop.xlane.xlu0 %1240 }
 0x979   :  { %v1277_v19 = vsub.f32 %v3383_v42, %v1241_v59 }
 0x97b   :  { %v1298_v13 = vmul.f32 1.442695, %v1277_v19  ;;  %v3457_v39 = vpop.eup %2351 }
 0x97c   :  { %v1332_v32 = vsel %vm137_vm1, %v3457_v39, 0.0 }
 0x97d   :  { %1258 = vmax.xlane.f32.xlu1 %v1257_v47  ;;  %2353 = vpow2.f32 %v1298_v13  ;;  %v2464_v47 = vld [vmem:[%s3849_s2 + $0x68] sm:$0xff] }
 0x97e   :  { %v3498_v13 = vadd.f32 %v2464_v47, %v1215_v37 }
 0x980   :  { %v1244_v4 = vpop.xlane.xlu1 %1243 }
 0x981   :  { %v1278_v18 = vsub.f32 %v3390_v44, %v1244_v4  ;;  %v1275_v44 = vsub.f32 %v3369_v53, %v1235_v15  ;;  %v2462_v53 = vld [vmem:[%s3849_s2 + $0x70] sm:$0xff]  ;;  %v1263_v4 = vsel %vm137_vm1, %v3498_v13, -inf }
 0x982   :  { %v3479_v50 = vadd.f32 %v2462_v53, %v1218_v21 }
 0x983   :  { %v1300_v41 = vmul.f32 1.442695, %v1278_v18  ;;  %v3462_v6 = vpop.eup %2353  ;;  %v1294_v25 = vmul.f32 1.442695, %v1275_v44 }
 0x984   :  { %v1335_v16 = vsel %vm137_vm1, %v3462_v6, 0.0  ;;  %v1266_v61 = vsel %vm137_vm1, %v3479_v50, -inf }
 0x985   :  { %1333 = vadd.xlane.f32.xlu1 %v1332_v32  ;;  %2355 = vpow2.f32 %v1300_v41 }
 0x988   :  { %v1247_v28 = vpop.xlane.xlu1 %1246 }
 0x989   :  { %v1279_v42 = vsub.f32 %v3397_v46, %v1247_v28 }
 0x98b   :  { %v1302_v9 = vmul.f32 1.442695, %v1279_v42  ;;  %v2255_v12 = vpop.permute.xlu0 %2254  ;;  %v3468_v40 = vpop.eup %2355 }
 0x98c   :  { %v2256_v17 = vunpack.i.l.bf16 %v2255_v12  ;;  %v2257_v22 = vunpack.i.h.bf16 %v2255_v12  ;;  %v1338_v46 = vsel %vm137_vm1, %v3468_v40, 0.0 }
 0x98d   :  { %2357 = vpow2.f32 %v1302_v9  ;;  %1336 = vadd.xlane.f32.xlu1 %v1335_v16 }
 0x98e   :  { %1472 = vmatpush.msrb.mxu0 %v2256_v17  ;;  %2359 = vpow2.f32 %v1294_v25 }
 0x990   :  { %1473 = vmatpush.msrb.mxu0 %v2257_v22  ;;  %v1250_v63 = vpop.xlane.xlu1 %1249 }
 0x991   :  { %v1280_v15 = vsub.f32 %v3407_v49, %v1250_v63 }
 0x993   :  { %v3470_v23 = vpop.eup %2357  ;;  %v1304_v19 = vmul.f32 1.442695, %v1280_v15 }
 0x994   :  { %v1341_v34 = vsel %vm137_vm1, %v3470_v23, 0.0  ;;  %v3486_v54 = vpop.eup %2359 }
 0x995   :  { %1339 = vadd.xlane.f32.xlu1 %v1338_v46  ;;  %1342 = vadd.xlane.f32.xlu0 %v1341_v34  ;;  %v1329_v59 = vsel %vm137_vm1, %v3486_v54, 0.0  ;;  %2361 = vpow2.f32 %v1304_v19 }
 0x99b   :  { %v3502_v18 = vpop.eup %2361 }
 0x99c   :  { %v1344_v49 = vsel %vm137_vm1, %v3502_v18, 0.0 }
 0x99d   :  { %1267 = vmax.xlane.f32.xlu1 %v1266_v61  ;;  %1270 = vmax.xlane.f32.xlu0 %v1269_v56 }
 0x99f   :  { %1330 = vadd.xlane.f32.xlu2 %v1329_v59 }
 0x9a7   :  { %1264 = vmax.xlane.f32.xlu2 %v1263_v4 }
 0x9af   :  { %1345 = vadd.xlane.f32.xlu2 %v1344_v49 }
 0x9d0   :  { %v1322_v32 = vpop.xlane.xlu2 %1321 }
 0x9d1   :  { %2363 = vrcp.f32 %v1322_v32 }
 0x9d7   :  { %v2364_v42 = vpop.eup %2363 }
 0x9d8   :  { %v2260_v41 = vpop.permute.xlu2 %2259  ;;  %v1325_v28 = vpop.xlane.xlu1 %1324  ;;  %v1384_v37 = vmul.f32 %v2364_v42, %v3411_v20 }
 0x9d9   :  { %v2261_v21 = vunpack.i.l.bf16 %v2260_v41  ;;  %v2262_v9 = vunpack.i.h.bf16 %v2260_v41  ;;  %2365 = vrcp.f32 %v1325_v28 }
 0x9db   :  { %1474 = vmatpush.msrb.mxu0 %v2261_v21 }
 0x9dd   :  { %1475 = vmatpush.msrb.mxu0 %v2262_v9 }
 0x9de   :  { %2182 = vmatmul.msk.f32.vlgmr.msrb.gmra.mxu0 %vm137_vm1, %v1384_v37 }
 0x9df   :  { %v2366_v16 = vpop.eup %2365 }
 0x9e0   :  { %v1328_v12 = vpop.xlane.xlu0 %1327  ;;  %v1253_v17 = vpop.xlane.xlu1 %1252  ;;  %v1385_v25 = vmul.f32 %v2366_v16, %v3415_v3 }
 0x9e1   :  { %v1281_v44 = vsub.f32 %v3422_v10, %v1253_v17  ;;  %2367 = vrcp.f32 %v1328_v12 }
 0x9e3   :  { %v1306_v22 = vmul.f32 1.442695, %v1281_v44 }
 0x9e5   :  { %2369 = vpow2.f32 %v1306_v22 }
 0x9e6   :  { %2183 = vmatmul.msk.f32.gmra.mxu0 %vm137_vm1, %v1385_v25 }
 0x9e7   :  { %v2368_v29 = vpop.eup %2367 }
 0x9e8   :  { %v1262_v46 = vpop.xlane.xlu0 %1261  ;;  %v1256_v34 = vpop.xlane.xlu1 %1255  ;;  %v1386_v56 = vmul.f32 %v2368_v29, %v3424_v0 }
 0x9e9   :  { %v1284_v20 = vsub.f32 %v3438_v57, %v1262_v46  ;;  %v1282_v53 = vsub.f32 %v3433_v33, %v1256_v34 }
 0x9eb   :  { %v3513_v36 = vpop.eup %2369  ;;  %v1312_v63 = vmul.f32 1.442695, %v1284_v20  ;;  %v1308_v61 = vmul.f32 1.442695, %v1282_v53 }
 0x9ec   :  { %v1347_v10 = vsel %vm137_vm1, %v3513_v36, 0.0 }
 0x9ed   :  { %2371 = vpow2.f32 %v1312_v63  ;;  %1348 = vadd.xlane.f32.xlu1 %v1347_v10 }
 0x9ee   :  { %2373 = vpow2.f32 %v1308_v61  ;;  %2184 = vmatmul.msk.f32.gmra.mxu0 %vm137_vm1, %v1386_v56 }
 0x9f0   :  { %v1259_v3 = vpop.xlane.xlu1 %1258 }
 0x9f1   :  { %v1283_v15 = vsub.f32 %v3452_v2, %v1259_v3 }
 0x9f3   :  { %v3520_v57 = vpop.eup %2371  ;;  %v1310_v33 = vmul.f32 1.442695, %v1283_v15 }
 0x9f4   :  { %v3522_v59 = vpop.eup %2373  ;;  %v1356_v19 = vsel %vm137_vm1, %v3520_v57, 0.0 }
 0x9f5   :  { %2375 = vpow2.f32 %v1310_v33  ;;  %1357 = vadd.xlane.f32.xlu1 %v1356_v19  ;;  %v1350_v0 = vsel %vm137_vm1, %v3522_v59, 0.0 }
 0x9f6   :  { %1351 = vadd.xlane.f32.xlu2 %v1350_v0 }
 0x9f8   :  { %v1334_v47 = vpop.xlane.xlu1 %1333 }
 0x9fb   :  { %v3528_v4 = vpop.eup %2375 }
 0x9fc   :  { %v1353_v2 = vsel %vm137_vm1, %v3528_v4, 0.0 }
 0x9fd   :  { %1354 = vadd.xlane.f32.xlu0 %v1353_v2 }
 0xa00   :  { %v1337_v49 = vpop.xlane.xlu1 %1336 }
 0xa08   :  { %v1343_v32 = vpop.xlane.xlu0 %1342  ;;  %v1340_v41 = vpop.xlane.xlu1 %1339 }
 0xa10   :  { %v1271_v28 = vpop.xlane.xlu0 %1270  ;;  %v1268_v42 = vpop.xlane.xlu1 %1267 }
 0xa11   :  { %v1287_v21 = vsub.f32 %v3484_v52, %v1271_v28  ;;  %v1286_v9 = vsub.f32 %v3479_v50, %v1268_v42 }
 0xa12   :  { %v1331_v37 = vpop.xlane.xlu2 %1330 }
 0xa13   :  { %v1318_v12 = vmul.f32 1.442695, %v1287_v21  ;;  %v1316_v17 = vmul.f32 1.442695, %v1286_v9  ;;  %2377 = vrcp.f32 %v1331_v37 }
 0xa15   :  { %2379 = vpow2.f32 %v1318_v12 }
 0xa16   :  { %2381 = vpow2.f32 %v1316_v17 }
 0xa17   :  { %2383 = vrcp.f32 %v1334_v47 }
 0xa19   :  { %v2378_v16 = vpop.eup %2377 }
 0xa1a   :  { %v1265_v44 = vpop.xlane.xlu2 %1264  ;;  %v1387_v22 = vmul.f32 %v2378_v16, %v3486_v54 }
 0xa1b   :  { %v3535_v25 = vpop.eup %2379  ;;  %v1285_v46 = vsub.f32 %v3498_v13, %v1265_v44 }
 0xa1c   :  { %v3538_v34 = vpop.eup %2381  ;;  %2185 = vmatmul.msk.f32.gmra.mxu0 %vm137_vm1, %v1387_v22  ;;  %v1365_v50 = vsel %vm137_vm1, %v3535_v25, 0.0 }
 0xa1d   :  { %v1314_v52 = vmul.f32 1.442695, %v1285_v46  ;;  %1366 = vadd.xlane.f32.xlu1 %v1365_v50  ;;  %v1362_v29 = vsel %vm137_vm1, %v3538_v34, 0.0  ;;  %v2384_v20 = vpop.eup %2383 }
 0xa1e   :  { %1363 = vadd.xlane.f32.xlu0 %v1362_v29  ;;  %v1388_v54 = vmul.f32 %v2384_v20, %v3457_v39 }
 0xa1f   :  { %2385 = vpow2.f32 %v1314_v52 }
 0xa20   :  { %2387 = vrcp.f32 %v1337_v49 }
 0xa21   :  { %2389 = vrcp.f32 %v1340_v41 }
 0xa22   :  { %2391 = vrcp.f32 %v1343_v32  ;;  %v1346_v3 = vpop.xlane.xlu2 %1345 }
 0xa23   :  { %2393 = vrcp.f32 %v1346_v3 }
 0xa24   :  { %2186 = vmatmul.msk.f32.gmra.mxu0 %vm137_vm1, %v1388_v54 }
 0xa25   :  { %v2386_v13 = vpop.eup %2385 }
 0xa26   :  { %v1359_v53 = vsel %vm137_vm1, %v2386_v13, 0.0  ;;  %v2388_v63 = vpop.eup %2387 }
 0xa27   :  { %1360 = vadd.xlane.f32.xlu2 %v1359_v53  ;;  %v1389_v61 = vmul.f32 %v2388_v63, %v3462_v6  ;;  %v2390_v10 = vpop.eup %2389 }
 0xa28   :  { %v1390_v56 = vmul.f32 %v2390_v10, %v3468_v40  ;;  %v2392_v39 = vpop.eup %2391 }
 0xa29   :  { %v1391_v15 = vmul.f32 %v2392_v39, %v3470_v23  ;;  %v2394_v33 = vpop.eup %2393  ;;  %v2199_v39 = vld [vmem:[%s3854_s7 + $0x28] sm:$0xff] }
 0xa2a   :  { %v1392_v19 = vmul.f32 %v2394_v33, %v3502_v18 }
 0xa2c   :  { %2187 = vmatmul.msk.f32.gmra.mxu0 %vm137_vm1, %v1389_v61 }
 0xa34   :  { %2188 = vmatmul.msk.f32.gmra.mxu0 %vm137_vm1, %v1390_v56 }
 0xa3c   :  { %2189 = vmatmul.msk.f32.gmra.mxu0 %vm137_vm1, %v1391_v15 }
 0xa44   :  { %2190 = vmatmul.msk.f32.gmra.mxu0 %vm137_vm1, %v1392_v19 }
 0xa5b   :  { %v1477_v28 = vpop.f32.mrf.mxu0 }
 0xa60   :  { %v1349_v6 = vpop.xlane.xlu1 %1348 }
 0xa61   :  { %2395 = vrcp.f32 %v1349_v6 }
 0xa63   :  { %v1480_v21 = vpop.f32.mrf.mxu0 }
 0xa64   :  { %v1526_v52 = vmul.f32 %v3237_v55, %v1480_v21 }
 0xa67   :  { %v2396_v0 = vpop.eup %2395 }
 0xa68   :  { %v1393_v47 = vmul.f32 %v2396_v0, %v3513_v36  ;;  %v1358_v32 = vpop.xlane.xlu1 %1357 }
 0xa69   :  { %v1352_v40 = vpop.xlane.xlu2 %1351 }
 0xa6a   :  { %2397 = vrcp.f32 %v1352_v40  ;;  %2191 = vmatmul.msk.f32.gmra.mxu0 %vm137_vm1, %v1393_v47 }
 0xa6b   :  { %v1483_v9 = vpop.f32.mrf.mxu0 }
 0xa6c   :  { %v1527_v63 = vmul.f32 %v3245_v43, %v1483_v9  ;;  %v2198_v43 = vld [vmem:[%s3854_s7 + $0x20] sm:$0xff] }
 0xa70   :  { %v2398_v2 = vpop.eup %2397  ;;  %v1355_v49 = vpop.xlane.xlu0 %1354 }
 0xa71   :  { %2399 = vrcp.f32 %v1355_v49  ;;  %v1394_v23 = vmul.f32 %v2398_v2, %v3522_v59  ;;  %v2201_v59 = vld [vmem:[%s3854_s7 + $0x38] sm:$0xff] }
 0xa72   :  { %2401 = vrcp.f32 %v1358_v32  ;;  %1582 = vmatpush.msra.mxu3 %v2201_v59 }
 0xa73   :  { %2192 = vmatmul.msk.f32.gmra.mxu0 %vm137_vm1, %v1394_v23 }
 0xa77   :  { %v2400_v18 = vpop.eup %2399 }
 0xa78   :  { %v1395_v41 = vmul.f32 %v2400_v18, %v3528_v4  ;;  %v2402_v36 = vpop.eup %2401 }
 0xa79   :  { %v1396_v42 = vmul.f32 %v2402_v36, %v3520_v57  ;;  %v2200_v57 = vld [vmem:[%s3854_s7 + $0x30] sm:$0xff] }
 0xa7a   :  { %1583 = vmatpush.msra.mxu3 %v2200_v57 }
 0xa7b   :  { %2193 = vmatmul.msk.f32.gmra.mxu0 %vm137_vm1, %v1395_v41 }
 0xa7c   :  { %1584 = vmatpush.msra.mxu3 %v2199_v39 }
 0xa7e   :  { %1585 = vmatpush.msra.mxu3 %v2198_v43 }
 0xa83   :  { %2194 = vmatmul.msk.f32.gmra.mxu0 %vm137_vm1, %v1396_v42 }
 0xa90   :  { %v1367_v22 = vpop.xlane.xlu1 %1366 }
 0xa91   :  { %v1364_v17 = vpop.xlane.xlu0 %1363 }
 0xa99   :  { %v1486_v37 = vpop.f32.mrf.mxu0 }
 0xa9a   :  { %v1361_v12 = vpop.xlane.xlu2 %1360  ;;  %v1528_v55 = vmul.f32 %v3253_v45, %v1486_v37  ;;  %v1525_v45 = vmul.f32 %v3229_v7, %v1477_v28 }
 0xa9b   :  { %2403 = vrcp.f32 %v1361_v12 }
 0xa9c   :  { %2405 = vrcp.f32 %v1364_v17 }
 0xa9d   :  { %2407 = vrcp.f32 %v1367_v22 }
 0xaa1   :  { %v2404_v4 = vpop.eup %2403  ;;  %v1489_v16 = vpop.f32.mrf.mxu0 }
 0xaa2   :  { %v1397_v44 = vmul.f32 %v2404_v4, %v2386_v13  ;;  %v2406_v46 = vpop.eup %2405  ;;  %v1529_v19 = vmul.f32 %v3261_v58, %v1489_v16 }
 0xaa3   :  { %v1398_v20 = vmul.f32 %v2406_v46, %v3538_v34  ;;  %v2408_v13 = vpop.eup %2407 }
 0xaa4   :  { %2195 = vmatmul.msk.f32.gmra.mxu0 %vm137_vm1, %v1397_v44  ;;  %v1399_v10 = vmul.f32 %v2408_v13, %v3535_v25  ;;  %v1541_v6 = vadd.f32 %v1529_v19, %v1525_v45  ;;  %v2207_v13 = vld [vmem:[%s3855_s8 + $0x20] sm:$0xff] }
 0xaa9   :  { %v1492_v50 = vpop.f32.mrf.mxu0 }
 0xaaa   :  { %v1530_v29 = vmul.f32 %v3269_v30, %v1492_v50 }
 0xaac   :  { %v1542_v54 = vadd.f32 %v1530_v29, %v1526_v52  ;;  %2196 = vmatmul.msk.f32.gmra.mxu0 %vm137_vm1, %v1398_v20 }
 0xab1   :  { %v1495_v53 = vpop.f32.mrf.mxu0 }
 0xab2   :  { %v1531_v61 = vmul.f32 %v3277_v26, %v1495_v53 }
 0xab4   :  { %v1543_v56 = vadd.f32 %v1531_v61, %v1527_v63  ;;  %2197 = vmatmul.msk.f32.gmra.mxu0 %vm137_vm1, %v1399_v10 }
 0xab9   :  { %v1498_v3 = vpop.f32.mrf.mxu0 }
 0xaba   :  { %v1532_v30 = vmul.f32 %v3285_v27, %v1498_v3 }
 0xabc   :  { %v1544_v34 = vadd.f32 %v1532_v30, %v1528_v55 }
 0xac1   :  { %v1501_v15 = vpop.f32.mrf.mxu0 }
 0xac2   :  { %v1533_v27 = vmul.f32 %v3293_v60, %v1501_v15  ;;  %v3645_v15 = vld [vmem:[%s3857_s10 + $0x4] sm:$0xf] }
 0xac4   :  { %v1545_v47 = vadd.f32 %v1541_v6, %v1533_v27  ;;  %v3651_v27 = vperm.slane %v3645_v15, 1 }
 0xae7   :  { %v1504_v26 = vpop.f32.mrf.mxu0 }
 0xae8   :  { %v1534_v49 = vmul.f32 %v3301_v38, %v1504_v26 }
 0xaea   :  { %v1546_v32 = vadd.f32 %v1542_v54, %v1534_v49  ;;  %v2208_v54 = vld [vmem:[%s3855_s8 + $0x28] sm:$0xff] }
 0xaf0   :  { %v1507_v25 = vpop.f32.mrf.mxu0 }
 0xaf1   :  { %v1535_v58 = vmul.f32 %v3309_v1, %v1507_v25 }
 0xaf3   :  { %v1547_v60 = vadd.f32 %v1543_v56, %v1535_v58 }
 0xaf8   :  { %v1510_v33 = vpop.f32.mrf.mxu0 }
 0xb00   :  { %v1513_v0 = vpop.f32.mrf.mxu0 }
 0xb01   :  { %v1537_v40 = vmul.f32 %v3325_v51, %v1513_v0  ;;  %v1536_v51 = vmul.f32 %v3317_v48, %v1510_v33  ;;  %v2210_v48 = vld [vmem:[%s3855_s8 + $0x38] sm:$0xff]  ;;  %v3648_v33 = vperm.slane %v3645_v15, 0 }
 0xb02   :  { %1740 = vmatpush.msra.mxu2 %v2210_v48 }
 0xb03   :  { %v1549_v2 = vadd.f32 %v1545_v47, %v1537_v40  ;;  %v1548_v38 = vadd.f32 %v1544_v34, %v1536_v51 }
 0xb05   :  { %2202 = vmatmul.msk.f32.vlgmr.msra.gmra.mxu3 %vm137_vm1, %v1549_v2 }
 0xb21   :  { %v1516_v23 = vpop.f32.mrf.mxu0 }
 0xb22   :  { %v1538_v18 = vmul.f32 %v3333_v62, %v1516_v23 }
 0xb24   :  { %v1550_v41 = vadd.f32 %v1546_v32, %v1538_v18 }
 0xb26   :  { %2203 = vmatmul.msk.f32.gmra.mxu3 %vm137_vm1, %v1550_v41 }
 0xb29   :  { %v1519_v7 = vpop.f32.mrf.mxu0 }
 0xb2a   :  { %v1539_v28 = vmul.f32 %v3341_v11, %v1519_v7 }
 0xb2c   :  { %v1551_v36 = vadd.f32 %v1547_v60, %v1539_v28 }
 0xb2e   :  { %2204 = vmatmul.msk.f32.gmra.mxu3 %vm137_vm1, %v1551_v36 }
 0xb31   :  { %v1522_v42 = vpop.f32.mrf.mxu0 }
 0xb32   :  { %v1540_v21 = vmul.f32 %v3349_v14, %v1522_v42  ;;  %v2209_v14 = vld [vmem:[%s3855_s8 + $0x30] sm:$0xff] }
 0xb33   :  { %1741 = vmatpush.msra.mxu2 %v2209_v14  ;;  %v2220_v14 = vld [vmem:[%s3856_s9 + $0x68] sm:$0xff] }
 0xb34   :  { %v1552_v9 = vadd.f32 %v1548_v38, %v1540_v21 }
 0xb35   :  { %1742 = vmatpush.msra.mxu2 %v2208_v54 }
 0xb36   :  { %2205 = vmatmul.msk.f32.gmra.mxu3 %vm137_vm1, %v1552_v9 }
 0xb37   :  { %1743 = vmatpush.msra.mxu2 %v2207_v13 }
 0xb88   :  { %v1587_v62 = vpop.f32.mrf.mxu3 }
 0xb89   :  { %v1601_v1 = vadd.f32 %v1587_v62, %v3185_v5  ;;  %v2222_v62 = vld [vmem:[%s3856_s9 + $0x78] sm:$0xff] }
 0xb8a   :  { %1790 = vmatpush.msrb.mxu3 %v2222_v62 }
 0xb8b   :  { %v1605_v59 = vsel %vm137_vm1, %v1601_v1, 0.0  ;;  %v1621_v37 = vmul.f32 %v1601_v1, %v1601_v1 }
 0xb8c   :  { %1606 = vadd.xlane.f32.xlu2 %v1605_v59 }
 0xb8d   :  { %v1625_v11 = vsel %vm137_vm1, %v1621_v37, 0.0 }
 0xb8e   :  { %1626 = vadd.xlane.f32.xlu0 %v1625_v11 }
 0xba9   :  { %v1590_v12 = vpop.f32.mrf.mxu3 }
 0xbaa   :  { %v3611_v5 = vadd.f32 %v1590_v12, %v3190_v8 }
 0xbac   :  { %v1608_v17 = vsel %vm137_vm1, %v3611_v5, 0.0  ;;  %v1622_v4 = vmul.f32 %v3611_v5, %v3611_v5 }
 0xbad   :  { %1609 = vadd.xlane.f32.xlu1 %v1608_v17 }
 0xbae   :  { %v1628_v16 = vsel %vm137_vm1, %v1622_v4, 0.0  ;;  %v2219_v4 = vld [vmem:[%s3856_s9 + $0x60] sm:$0xff] }
 0xbaf   :  { %1629 = vadd.xlane.f32.xlu2 %v1628_v16 }
 0xbb1   :  { %v1593_v44 = vpop.f32.mrf.mxu3 }
 0xbb2   :  { %v3619_v57 = vadd.f32 %v1593_v44, %v3195_v31 }
 0xbb4   :  { %v1611_v22 = vsel %vm137_vm1, %v3619_v57, 0.0  ;;  %v1623_v8 = vmul.f32 %v3619_v57, %v3619_v57 }
 0xbb5   :  { %1612 = vadd.xlane.f32.xlu0 %v1611_v22 }
 0xbb6   :  { %v1631_v46 = vsel %vm137_vm1, %v1623_v8, 0.0  ;;  %v2218_v8 = vld [vmem:[%s3856_s9 + $0x58] sm:$0xff] }
 0xbb7   :  { %1632 = vadd.xlane.f32.xlu1 %v1631_v46 }
 0xbb9   :  { %v1596_v50 = vpop.f32.mrf.mxu3 }
 0xbba   :  { %v3627_v52 = vadd.f32 %v1596_v50, %v3200_v35 }
 0xbbc   :  { %v1614_v29 = vsel %vm137_vm1, %v3627_v52, 0.0  ;;  %v1624_v31 = vmul.f32 %v3627_v52, %v3627_v52 }
 0xbbd   :  { %1615 = vadd.xlane.f32.xlu2 %v1614_v29 }
 0xbbe   :  { %v1634_v20 = vsel %vm137_vm1, %v1624_v31, 0.0  ;;  %v2217_v31 = vld [vmem:[%s3856_s9 + $0x50] sm:$0xff] }
 0xbbf   :  { %1635 = vadd.xlane.f32.xlu0 %v1634_v20 }
 0xbff   :  { %v1607_v35 = vpop.xlane.xlu2 %1606 }
 0xc00   :  { %v1617_v53 = vmul.f32 %v1607_v35, %v3050_v24 }
 0xc01   :  { %v1627_v63 = vpop.xlane.xlu0 %1626 }
 0xc02   :  { %v1641_v61 = vmul.f32 %v1617_v53, %v1617_v53  ;;  %v1637_v10 = vmul.f32 %v1627_v63, %v3050_v24  ;;  %v1649_v25 = vsub.f32 %v1601_v1, %v1617_v53  ;;  %v2221_v1 = vld [vmem:[%s3856_s9 + $0x70] sm:$0xff] }
 0xc03   :  { %1791 = vmatpush.msrb.mxu3 %v2221_v1 }
 0xc04   :  { %v1645_v56 = vsub.f32 %v1637_v10, %v1641_v61 }
 0xc05   :  { %1792 = vmatpush.msrb.mxu3 %v2220_v14 }
 0xc06   :  { %v1653_v3 = vadd.f32 1e-05, %v1645_v56 }
 0xc07   :  { %1793 = vmatpush.msrb.mxu3 %v2219_v4 }
 0xc08   :  { %2409 = vrsqrt.f32 %v1653_v3  ;;  %vm1663_vm14 = vweird.f32 %v1653_v3 }
 0xc09   :  { %1794 = vmatpush.msrb.mxu3 %v2218_v8 }
 0xc0b   :  { %1795 = vmatpush.msrb.mxu3 %v2217_v31 }
 0xc0e   :  { %v2410_v55 = vpop.eup %2409 }
 0xc0f   :  { %v1658_v30 = vmul.f32 %v2410_v55, %v1653_v3  ;;  %vm1664_vm13 = vweird.f32 %v2410_v55 }
 0xc10   :  { %vm1665_vm0 = vmor %vm1663_vm14, %vm1664_vm13 }
 0xc11   :  { %v1659_v34 = vmul.f32 %v2410_v55, %v1658_v30 }
 0xc13   :  { %v1660_v39 = vmul.f32 0.5, %v1659_v34 }
 0xc15   :  { %v1661_v43 = vsub.f32 1.5, %v1660_v39 }
 0xc17   :  { %v1662_v26 = vmul.f32 %v2410_v55, %v1661_v43 }
 0xc19   :  { %v1666_v19 = vsel %vm1665_vm0, %v2410_v55, %v1662_v26 }
 0xc1a   :  { %v1697_v45 = vmul.f32 %v1666_v19, %v1649_v25 }
 0xc1c   :  { %v1702_v6 = vmul.f32 %v3648_v33, %v1697_v45 }
 0xc1e   :  { %v3655_v0 = vadd.f32 %v3651_v27, %v1702_v6 }
 0xc20   :  { %2211 = vmatmul.msk.f32.vlgmr.msra.gmra.mxu2 %vm137_vm1, %v3655_v0  ;;  %v1610_v47 = vpop.xlane.xlu1 %1609 }
 0xc21   :  { %v1618_v40 = vmul.f32 %v1610_v47, %v3050_v24 }
 0xc22   :  { %v1630_v2 = vpop.xlane.xlu2 %1629 }
 0xc23   :  { %v1642_v49 = vmul.f32 %v1618_v40, %v1618_v40  ;;  %v1638_v23 = vmul.f32 %v1630_v2, %v3050_v24  ;;  %v1650_v29 = vsub.f32 %v3611_v5, %v1618_v40  ;;  %v2216_v2 = vld [vmem:[%s3856_s9 + $0x48] sm:$0xff] }
 0xc24   :  { %1796 = vmatpush.msrb.mxu3 %v2216_v2 }
 0xc25   :  { %v1646_v32 = vsub.f32 %v1638_v23, %v1642_v49 }
 0xc27   :  { %v1654_v18 = vadd.f32 1e-05, %v1646_v32 }
 0xc28   :  { %v1613_v41 = vpop.xlane.xlu0 %1612 }
 0xc29   :  { %2411 = vrsqrt.f32 %v1654_v18  ;;  %v1619_v58 = vmul.f32 %v1613_v41, %v3050_v24  ;;  %vm1673_vm3 = vweird.f32 %v1654_v18 }
 0xc2a   :  { %v1633_v7 = vpop.xlane.xlu1 %1632 }
 0xc2b   :  { %v1643_v60 = vmul.f32 %v1619_v58, %v1619_v58  ;;  %v1639_v28 = vmul.f32 %v1633_v7, %v3050_v24  ;;  %v1651_v3 = vsub.f32 %v3619_v57, %v1619_v58 }
 0xc2d   :  { %v1647_v36 = vsub.f32 %v1639_v28, %v1643_v60 }
 0xc2f   :  { %v2412_v51 = vpop.eup %2411  ;;  %v1655_v42 = vadd.f32 1e-05, %v1647_v36 }
 0xc30   :  { %v1668_v38 = vmul.f32 %v2412_v51, %v1654_v18  ;;  %v1616_v21 = vpop.xlane.xlu2 %1615  ;;  %vm1674_vm2 = vweird.f32 %v2412_v51 }
 0xc31   :  { %2413 = vrsqrt.f32 %v1655_v42  ;;  %v1620_v9 = vmul.f32 %v1616_v21, %v3050_v24  ;;  %vm1675_vm4 = vmor %vm1673_vm3, %vm1674_vm2  ;;  %vm1683_vm6 = vweird.f32 %v1655_v42 }
 0xc32   :  { %v1669_v59 = vmul.f32 %v2412_v51, %v1668_v38  ;;  %v1636_v37 = vpop.xlane.xlu0 %1635 }
 0xc33   :  { %v1644_v11 = vmul.f32 %v1620_v9, %v1620_v9  ;;  %v1640_v48 = vmul.f32 %v1636_v37, %v3050_v24  ;;  %v1652_v45 = vsub.f32 %v3627_v52, %v1620_v9  ;;  %v2215_v52 = vld [vmem:[%s3856_s9 + $0x40] sm:$0xff] }
 0xc34   :  { %v1670_v12 = vmul.f32 0.5, %v1669_v59  ;;  %1797 = vmatpush.msrb.mxu3 %v2215_v52 }
 0xc35   :  { %v1648_v17 = vsub.f32 %v1640_v48, %v1644_v11 }
 0xc36   :  { %v1671_v16 = vsub.f32 1.5, %v1670_v12 }
 0xc37   :  { %v2414_v44 = vpop.eup %2413  ;;  %v1656_v22 = vadd.f32 1e-05, %v1648_v17 }
 0xc38   :  { %v1672_v46 = vmul.f32 %v2412_v51, %v1671_v16  ;;  %v1678_v50 = vmul.f32 %v2414_v44, %v1655_v42  ;;  %vm1684_vm5 = vweird.f32 %v2414_v44 }
 0xc39   :  { %2415 = vrsqrt.f32 %v1656_v22  ;;  %vm1685_vm7 = vmor %vm1683_vm6, %vm1684_vm5  ;;  %vm1693_vm9 = vweird.f32 %v1656_v22 }
 0xc3a   :  { %v1679_v20 = vmul.f32 %v2414_v44, %v1678_v50  ;;  %v1676_v54 = vsel %vm1675_vm4, %v2412_v51, %v1672_v46 }
 0xc3b   :  { %v1698_v13 = vmul.f32 %v1676_v54, %v1650_v29 }
 0xc3c   :  { %v1680_v35 = vmul.f32 0.5, %v1679_v20 }
 0xc3d   :  { %v1703_v53 = vmul.f32 %v3648_v33, %v1698_v13 }
 0xc3e   :  { %v1681_v63 = vsub.f32 1.5, %v1680_v35 }
 0xc3f   :  { %v2416_v61 = vpop.eup %2415  ;;  %v1708_v10 = vadd.f32 %v3651_v27, %v1703_v53 }
 0xc40   :  { %v1682_v5 = vmul.f32 %v2414_v44, %v1681_v63  ;;  %v1688_v56 = vmul.f32 %v2416_v61, %v1656_v22  ;;  %vm1694_vm8 = vweird.f32 %v2416_v61 }
 0xc41   :  { %2212 = vmatmul.msk.f32.gmra.mxu2 %vm137_vm1, %v1708_v10  ;;  %vm1695_vm10 = vmor %vm1693_vm9, %vm1694_vm8 }
 0xc42   :  { %v1689_v55 = vmul.f32 %v2416_v61, %v1688_v56  ;;  %v1686_v30 = vsel %vm1685_vm7, %v2414_v44, %v1682_v5 }
 0xc43   :  { %v1699_v34 = vmul.f32 %v1686_v30, %v1651_v3 }
 0xc44   :  { %v1690_v39 = vmul.f32 0.5, %v1689_v55 }
 0xc45   :  { %v1704_v43 = vmul.f32 %v3648_v33, %v1699_v34 }
 0xc46   :  { %v1691_v26 = vsub.f32 1.5, %v1690_v39 }
 0xc47   :  { %v1709_v25 = vadd.f32 %v3651_v27, %v1704_v43 }
 0xc48   :  { %v1692_v19 = vmul.f32 %v2416_v61, %v1691_v26 }
 0xc49   :  { %2213 = vmatmul.msk.f32.gmra.mxu2 %vm137_vm1, %v1709_v25 }
 0xc4a   :  { %v1696_v57 = vsel %vm1695_vm10, %v2416_v61, %v1692_v19 }
 0xc4b   :  { %v1700_v6 = vmul.f32 %v1696_v57, %v1652_v45 }
 0xc4d   :  { %v1705_v47 = vmul.f32 %v3648_v33, %v1700_v6 }
 0xc4f   :  { %v1710_v40 = vadd.f32 %v3651_v27, %v1705_v47 }
 0xc51   :  { %2214 = vmatmul.msk.f32.gmra.mxu2 %vm137_vm1, %v1710_v40 }
 0xca3   :  { %v1745_v49 = vpop.f32.mrf.mxu2 }
 0xca4   :  { %v1757_v23 = vmax.f32 %v1745_v49, 0.0 }
 0xca6   :  { %2223 = vmatmul.msk.f32.vlgmr.msrb.gmra.mxu3 %vm877_vm15, %v1757_v23 }
 0xcc4   :  { %v1748_v32 = vpop.f32.mrf.mxu2 }
 0xcc5   :  { %v1758_v33 = vmax.f32 %v1748_v32, 0.0 }
 0xcc7   :  { %2224 = vmatmul.msk.f32.gmra.mxu3 %vm877_vm15, %v1758_v33 }
 0xccc   :  { %v1751_v27 = vpop.f32.mrf.mxu2 }
 0xccd   :  { %v1759_v18 = vmax.f32 %v1751_v27, 0.0 }
 0xccf   :  { %2225 = vmatmul.msk.f32.gmra.mxu3 %vm877_vm15, %v1759_v18 }
 0xcd4   :  { %v1754_v41 = vpop.f32.mrf.mxu2 }
 0xcd5   :  { %v1760_v58 = vmax.f32 %v1754_v41, 0.0 }
 0xcd7   :  { %2226 = vmatmul.msk.f32.gmra.mxu3 %vm877_vm15, %v1760_v58 }
 0xd29   :  { %v1799_v7 = vpop.f32.mrf.mxu3 }
 0xd2a   :  { %v3718_v1 = vadd.f32 %v1799_v7, %v3655_v0  ;;  %v1911_v7 = vperm.slane %v3645_v15, 2 }
 0xd2c   :  { %v1831_v14 = vmul.f32 %v3718_v1, %v3718_v1  ;;  %v1815_v4 = vsel %vm137_vm1, %v3718_v1, 0.0 }
 0xd2e   :  { %v1835_v12 = vsel %vm137_vm1, %v1831_v14, 0.0 }
 0xd4a   :  { %v1802_v60 = vpop.f32.mrf.mxu3 }
 0xd4b   :  { %v3705_v28 = vadd.f32 %v1802_v60, %v1708_v10 }
 0xd4d   :  { %v1818_v36 = vsel %vm137_vm1, %v3705_v28, 0.0  ;;  %v1832_v0 = vmul.f32 %v3705_v28, %v3705_v28 }
 0xd4e   :  { %1819 = vadd.xlane.f32.xlu1 %v1818_v36 }
 0xd4f   :  { %v1838_v17 = vsel %vm137_vm1, %v1832_v0, 0.0 }
 0xd52   :  { %v1805_v51 = vpop.f32.mrf.mxu3 }
 0xd53   :  { %v3709_v42 = vadd.f32 %v1805_v51, %v1709_v25 }
 0xd55   :  { %v1821_v38 = vsel %vm137_vm1, %v3709_v42, 0.0  ;;  %v1833_v21 = vmul.f32 %v3709_v42, %v3709_v42 }
 0xd56   :  { %1822 = vadd.xlane.f32.xlu2 %v1821_v38 }
 0xd57   :  { %v1841_v59 = vsel %vm137_vm1, %v1833_v21, 0.0 }
 0xd5a   :  { %v1808_v9 = vpop.f32.mrf.mxu3 }
 0xd5b   :  { %v3715_v62 = vadd.f32 %v1808_v9, %v1710_v40 }
 0xd5d   :  { %v1824_v37 = vsel %vm137_vm1, %v3715_v62, 0.0  ;;  %v1834_v11 = vmul.f32 %v3715_v62, %v3715_v62 }
 0xd5e   :  { %1842 = vadd.xlane.f32.xlu2 %v1841_v59  ;;  %1825 = vadd.xlane.f32.xlu1 %v1824_v37  ;;  %v1916_v59 = vperm.slane %v3645_v15, 3 }
 0xd5f   :  { %v1844_v48 = vsel %vm137_vm1, %v1834_v11, 0.0 }
 0xd60   :  { %1845 = vadd.xlane.f32.xlu0 %v1844_v48 }
 0xd66   :  { %1836 = vadd.xlane.f32.xlu2 %v1835_v12  ;;  %1839 = vadd.xlane.f32.xlu1 %v1838_v17 }
 0xd68   :  { %1816 = vadd.xlane.f32.xlu0 %v1815_v4 }
 0xdc1   :  { %v1820_v16 = vpop.xlane.xlu1 %1819 }
 0xdc2   :  { %v3739_v53 = vmul.f32 %v1820_v16, %v3050_v24 }
 0xdc4   :  { %v1852_v56 = vmul.f32 %v3739_v53, %v3739_v53 }
 0xdc9   :  { %v1823_v44 = vpop.xlane.xlu2 %1822 }
 0xdca   :  { %v1829_v22 = vmul.f32 %v1823_v44, %v3050_v24 }
 0xdcc   :  { %v1853_v50 = vmul.f32 %v1829_v22, %v1829_v22  ;;  %v1861_v58 = vsub.f32 %v3709_v42, %v1829_v22 }
 0xdd1   :  { %v1843_v8 = vpop.xlane.xlu2 %1842  ;;  %v1826_v46 = vpop.xlane.xlu1 %1825 }
 0xdd2   :  { %v1849_v29 = vmul.f32 %v1843_v8, %v3050_v24  ;;  %v1830_v31 = vmul.f32 %v1826_v46, %v3050_v24 }
 0xdd3   :  { %v1846_v20 = vpop.xlane.xlu0 %1845 }
 0xdd4   :  { %v1857_v54 = vsub.f32 %v1849_v29, %v1853_v50  ;;  %v1854_v13 = vmul.f32 %v1830_v31, %v1830_v31  ;;  %v1850_v35 = vmul.f32 %v1846_v20, %v3050_v24  ;;  %v1862_v21 = vsub.f32 %v3715_v62, %v1830_v31 }
 0xdd5   :  { %v1860_v62 = vsub.f32 %v3705_v28, %v3739_v53 }
 0xdd6   :  { %v1865_v63 = vadd.f32 1e-05, %v1857_v54  ;;  %v1858_v61 = vsub.f32 %v1850_v35, %v1854_v13 }
 0xdd8   :  { %2417 = vrsqrt.f32 %v1865_v63  ;;  %v1866_v10 = vadd.f32 1e-05, %v1858_v61  ;;  %vm1893_vm11 = vweird.f32 %v1865_v63 }
 0xdd9   :  { %v1840_v5 = vpop.xlane.xlu1 %1839  ;;  %v1837_v55 = vpop.xlane.xlu2 %1836 }
 0xdda   :  { %2419 = vrsqrt.f32 %v1866_v10  ;;  %v1848_v3 = vmul.f32 %v1840_v5, %v3050_v24  ;;  %v1847_v26 = vmul.f32 %v1837_v55, %v3050_v24  ;;  %vm1903_vm14 = vweird.f32 %v1866_v10 }
 0xddb   :  { %v1817_v30 = vpop.xlane.xlu0 %1816 }
 0xddc   :  { %v1856_v34 = vsub.f32 %v1848_v3, %v1852_v56  ;;  %v3745_v39 = vmul.f32 %v1817_v30, %v3050_v24 }
 0xdde   :  { %v2418_v43 = vpop.eup %2417  ;;  %v1864_v25 = vadd.f32 1e-05, %v1856_v34  ;;  %v1851_v19 = vmul.f32 %v3745_v39, %v3745_v39  ;;  %v1859_v20 = vsub.f32 %v3718_v1, %v3745_v39 }
 0xddf   :  { %v1888_v45 = vmul.f32 %v2418_v43, %v1865_v63  ;;  %vm1894_vm15 = vweird.f32 %v2418_v43 }
 0xde0   :  { %v2420_v57 = vpop.eup %2419  ;;  %2421 = vrsqrt.f32 %v1864_v25  ;;  %v1855_v6 = vsub.f32 %v1847_v26, %v1851_v19  ;;  %vm1895_vm13 = vmor %vm1893_vm11, %vm1894_vm15  ;;  %vm1883_vm3 = vweird.f32 %v1864_v25 }
 0xde1   :  { %v1889_v47 = vmul.f32 %v2418_v43, %v1888_v45  ;;  %v1898_v40 = vmul.f32 %v2420_v57, %v1866_v10  ;;  %vm1904_vm12 = vweird.f32 %v2420_v57 }
 0xde2   :  { %v1863_v2 = vadd.f32 1e-05, %v1855_v6  ;;  %vm1905_vm0 = vmor %vm1903_vm14, %vm1904_vm12 }
 0xde3   :  { %v1890_v52 = vmul.f32 0.5, %v1889_v47  ;;  %v1899_v49 = vmul.f32 %v2420_v57, %v1898_v40 }
 0xde4   :  { %2423 = vrsqrt.f32 %v1863_v2  ;;  %vm1873_vm6 = vweird.f32 %v1863_v2 }
 0xde5   :  { %v1891_v23 = vsub.f32 1.5, %v1890_v52  ;;  %v1900_v32 = vmul.f32 0.5, %v1899_v49 }
 0xde6   :  { %v2422_v33 = vpop.eup %2421 }
 0xde7   :  { %v1892_v27 = vmul.f32 %v2418_v43, %v1891_v23  ;;  %v1901_v18 = vsub.f32 1.5, %v1900_v32  ;;  %v1878_v41 = vmul.f32 %v2422_v33, %v1864_v25  ;;  %vm1884_vm2 = vweird.f32 %v2422_v33 }
 0xde8   :  { %vm1885_vm4 = vmor %vm1883_vm3, %vm1884_vm2 }
 0xde9   :  { %v1902_v60 = vmul.f32 %v2420_v57, %v1901_v18  ;;  %v1879_v36 = vmul.f32 %v2422_v33, %v1878_v41  ;;  %v1896_v51 = vsel %vm1895_vm13, %v2418_v43, %v1892_v27 }
 0xdea   :  { %v2424_v38 = vpop.eup %2423  ;;  %v1909_v9 = vmul.f32 %v1896_v51, %v1861_v58 }
 0xdeb   :  { %v1906_v37 = vsel %vm1905_vm0, %v2420_v57, %v1902_v60  ;;  %v1880_v11 = vmul.f32 0.5, %v1879_v36  ;;  %v1868_v48 = vmul.f32 %v2424_v38, %v1863_v2  ;;  %vm1874_vm5 = vweird.f32 %v2424_v38 }
 0xdec   :  { %v1914_v14 = vmul.f32 %v1911_v7, %v1909_v9  ;;  %v1910_v0 = vmul.f32 %v1906_v37, %v1862_v21  ;;  %vm1875_vm7 = vmor %vm1873_vm6, %vm1874_vm5  ;;  %vm2080_vm5 = vcmask 74752  }
 0xded   :  { %v1881_v42 = vsub.f32 1.5, %v1880_v11  ;;  %v1869_v12 = vmul.f32 %v2424_v38, %v1868_v48 }
 0xdee   :  { %v3754_v17 = vadd.f32 %v1916_v59, %v1914_v14  ;;  %v1915_v4 = vmul.f32 %v1911_v7, %v1910_v0 }
 0xdef   :  { %v1882_v16 = vmul.f32 %v2422_v33, %v1881_v42  ;;  %v1870_v44 = vmul.f32 0.5, %v1869_v12 }
 0xdf0   :  { %v1928_v15 = vsel %vm137_vm1, %v3754_v17, 0.0  ;;  %v3760_v22 = vadd.f32 %v1916_v59, %v1915_v4  ;;  %v1940_v54 = vmul.f32 %v3754_v17, %v3754_v17 }
 0xdf1   :  { %v1871_v8 = vsub.f32 1.5, %v1870_v44  ;;  %1929 = vadd.xlane.f32.xlu1 %v1928_v15  ;;  %v1886_v46 = vsel %vm1885_vm4, %v2422_v33, %v1882_v16 }
 0xdf2   :  { %v1941_v50 = vmul.f32 %v3760_v22, %v3760_v22  ;;  %v1908_v29 = vmul.f32 %v1886_v46, %v1860_v62  ;;  %v1948_v10 = vsel %vm137_vm1, %v1940_v54, 0.0  ;;  %v1931_v30 = vsel %vm137_vm1, %v3760_v22, 0.0 }
 0xdf3   :  { %v1872_v31 = vmul.f32 %v2424_v38, %v1871_v8 }
 0xdf4   :  { %v1951_v28 = vsel %vm137_vm1, %v1941_v50, 0.0  ;;  %v1913_v13 = vmul.f32 %v1911_v7, %v1908_v29 }
 0xdf5   :  { %v1876_v35 = vsel %vm1875_vm7, %v2424_v38, %v1872_v31  ;;  %1952 = vadd.xlane.f32.xlu2 %v1951_v28 }
 0xdf6   :  { %v1907_v53 = vmul.f32 %v1876_v35, %v1859_v20  ;;  %v3769_v63 = vadd.f32 %v1916_v59, %v1913_v13  ;;  %v3813_v20 = vld [vmem:[%s3858_s11] sm:$0x7] }
 0xdf8   :  { %v1912_v61 = vmul.f32 %v1911_v7, %v1907_v53  ;;  %v1925_v5 = vsel %vm137_vm1, %v3769_v63, 0.0  ;;  %v1939_v34 = vmul.f32 %v3769_v63, %v3769_v63 }
 0xdf9   :  { %1949 = vadd.xlane.f32.xlu1 %v1948_v10  ;;  %1926 = vadd.xlane.f32.xlu0 %v1925_v5  ;;  %v2018_v5 = vperm.slane %v3813_v20, 0 }
 0xdfa   :  { %v3774_v1 = vadd.f32 %v1916_v59, %v1912_v61  ;;  %v1945_v39 = vsel %vm137_vm1, %v1939_v34, 0.0 }
 0xdfc   :  { %v1922_v56 = vsel %vm137_vm1, %v3774_v1, 0.0  ;;  %v1938_v3 = vmul.f32 %v3774_v1, %v3774_v1 }
 0xdfd   :  { %1923 = vadd.xlane.f32.xlu2 %v1922_v56 }
 0xdfe   :  { %v1942_v55 = vsel %vm137_vm1, %v1938_v3, 0.0 }
 0xe01   :  { %1943 = vadd.xlane.f32.xlu1 %v1942_v55  ;;  %1932 = vadd.xlane.f32.xlu0 %v1931_v30 }
 0xe09   :  { %1946 = vadd.xlane.f32.xlu0 %v1945_v39 }
 0xe64   :  { %v1930_v43 = vpop.xlane.xlu1 %1929 }
 0xe65   :  { %v3787_v25 = vmul.f32 %v1930_v43, %v3050_v24 }
 0xe67   :  { %v1960_v57 = vmul.f32 %v3787_v25, %v3787_v25  ;;  %v1968_v35 = vsub.f32 %v3754_v17, %v3787_v25  ;;  %v2023_v25 = vperm.slane %v3813_v20, 1 }
 0xe68   :  { %v1953_v26 = vpop.xlane.xlu2 %1952 }
 0xe69   :  { %v1957_v18 = vmul.f32 %v1953_v26, %v3050_v24 }
 0xe6c   :  { %v1927_v19 = vpop.xlane.xlu0 %1926  ;;  %v1950_v45 = vpop.xlane.xlu1 %1949 }
 0xe6d   :  { %v1956_v6 = vmul.f32 %v1950_v45, %v3050_v24  ;;  %v3801_v60 = vmul.f32 %v1927_v19, %v3050_v24 }
 0xe6f   :  { %v1964_v47 = vsub.f32 %v1956_v6, %v1960_v57  ;;  %v1959_v37 = vmul.f32 %v3801_v60, %v3801_v60 }
 0xe70   :  { %v1924_v40 = vpop.xlane.xlu2 %1923 }
 0xe71   :  { %v1972_v2 = vadd.f32 1e-05, %v1964_v47  ;;  %v3793_v52 = vmul.f32 %v1924_v40, %v3050_v24 }
 0xe73   :  { %2425 = vrsqrt.f32 %v1972_v2  ;;  %v1958_v32 = vmul.f32 %v3793_v52, %v3793_v52  ;;  %vm2000_vm9 = vweird.f32 %v1972_v2  ;;  %v1966_v17 = vsub.f32 %v3774_v1, %v3793_v52 }
 0xe74   :  { %v1933_v49 = vpop.xlane.xlu0 %1932  ;;  %v1944_v23 = vpop.xlane.xlu1 %1943 }
 0xe75   :  { %v1937_v33 = vmul.f32 %v1933_v49, %v3050_v24  ;;  %v1954_v27 = vmul.f32 %v1944_v23, %v3050_v24 }
 0xe77   :  { %v1961_v41 = vmul.f32 %v1937_v33, %v1937_v33  ;;  %v1962_v58 = vsub.f32 %v1954_v27, %v1958_v32  ;;  %v1969_v56 = vsub.f32 %v3760_v22, %v1937_v33  ;;  %v1967_v22 = vsub.f32 %v3769_v63, %v3801_v60  ;;  %v2028_v32 = vld [vmem:[%s3851_s4] sm:$0x3]  ;;  %v2055_v63 = vld [vmem:[%s3859_s12 + $0x18] sm:$0xff]  ;;  %v2054_v33 = vld [vmem:[%s3859_s12 + $0x10] sm:$0xff]  ;;  %s2494_s4 = smov [#allocation2]  }
 0xe78   :  { %v2053_v27 = vld [vmem:[%s3859_s12 + $0x8] sm:$0xff]  ;;  %s2087_s8 = sshll.u32 %s2494_s4, 4  ;;  %s2088_s8 = int_to_ptr.vmem [resolvable:$true] %s2087_s8 }
 0xe79   :  { %v2426_v7 = vpop.eup %2425  ;;  %v1965_v36 = vsub.f32 %v1957_v18, %v1961_v41  ;;  %v1970_v51 = vadd.f32 1e-05, %v1962_v58  ;;  %v2052_v18 = vld [vmem:[%s3859_s12] sm:$0xff]  ;;  %v2056_v58 = vperm.slane %v3813_v20, 2 }
 0xe7a   :  { %v1995_v38 = vmul.f32 %v2426_v7, %v1972_v2  ;;  %vm2001_vm8 = vweird.f32 %v2426_v7 }
 0xe7b   :  { %v1973_v21 = vadd.f32 1e-05, %v1965_v36  ;;  %2427 = vrsqrt.f32 %v1970_v51  ;;  %vm3806_vm10 = vmor %vm2000_vm9, %vm2001_vm8  ;;  %vm1980_vm14 = vweird.f32 %v1970_v51 }
 0xe7c   :  { %v1996_v9 = vmul.f32 %v2426_v7, %v1995_v38  ;;  %v1947_v59 = vpop.xlane.xlu0 %1946 }
 0xe7d   :  { %2429 = vrsqrt.f32 %v1973_v21  ;;  %v1955_v11 = vmul.f32 %v1947_v59, %v3050_v24  ;;  %vm2010_vm11 = vweird.f32 %v1973_v21 }
 0xe7e   :  { %v1997_v48 = vmul.f32 0.5, %v1996_v9 }
 0xe7f   :  { %v1963_v14 = vsub.f32 %v1955_v11, %v1959_v37 }
 0xe80   :  { %v1998_v12 = vsub.f32 1.5, %v1997_v48 }
 0xe81   :  { %v2428_v0 = vpop.eup %2427  ;;  %v1971_v42 = vadd.f32 1e-05, %v1963_v14 }
 0xe82   :  { %v1975_v4 = vmul.f32 %v2428_v0, %v1970_v51  ;;  %v1999_v15 = vmul.f32 %v2426_v7, %v1998_v12  ;;  %vm1981_vm12 = vweird.f32 %v2428_v0 }
 0xe83   :  { %v2430_v16 = vpop.eup %2429  ;;  %2431 = vrsqrt.f32 %v1971_v42  ;;  %vm1982_vm0 = vmor %vm1980_vm14, %vm1981_vm12  ;;  %vm1990_vm3 = vweird.f32 %v1971_v42 }
 0xe84   :  { %v2005_v44 = vmul.f32 %v2430_v16, %v1973_v21  ;;  %v1976_v62 = vmul.f32 %v2428_v0, %v1975_v4  ;;  %vm2011_vm15 = vweird.f32 %v2430_v16  ;;  %v2003_v13 = vsel %vm3806_vm10, %v2426_v7, %v1999_v15 }
 0xe85   :  { %vm2012_vm13 = vmor %vm2010_vm11, %vm2011_vm15  ;;  %v2016_v3 = vmul.f32 %v2003_v13, %v1968_v35 }
 0xe86   :  { %v2006_v8 = vmul.f32 %v2430_v16, %v2005_v44  ;;  %v1977_v46 = vmul.f32 0.5, %v1976_v62 }
 0xe87   :  { %v2021_v19 = vmul.f32 %v2018_v5, %v2016_v3 }
 0xe88   :  { %v2007_v50 = vmul.f32 0.5, %v2006_v8  ;;  %v1978_v29 = vsub.f32 1.5, %v1977_v46 }
 0xe89   :  { %v2432_v31 = vpop.eup %2431  ;;  %v2026_v40 = vadd.f32 %v2023_v25, %v2021_v19 }
 0xe8a   :  { %v2008_v28 = vsub.f32 1.5, %v2007_v50  ;;  %v1985_v54 = vmul.f32 %v2432_v31, %v1971_v42  ;;  %v1979_v61 = vmul.f32 %v2428_v0, %v1978_v29  ;;  %vm1991_vm2 = vweird.f32 %v2432_v31 }
 0xe8b   :  { %vm1992_vm4 = vmor %vm1990_vm3, %vm1991_vm2 }
 0xe8c   :  { %v2009_v53 = vmul.f32 %v2430_v16, %v2008_v28  ;;  %v1986_v10 = vmul.f32 %v2432_v31, %v1985_v54  ;;  %v1983_v43 = vsel %vm1982_vm0, %v2428_v0, %v1979_v61 }
 0xe8d   :  { %v2014_v6 = vmul.f32 %v1983_v43, %v1966_v17 }
 0xe8e   :  { %v2013_v55 = vsel %vm2012_vm13, %v2430_v16, %v2009_v53  ;;  %v1987_v30 = vmul.f32 0.5, %v1986_v10 }
 0xe8f   :  { %v2017_v34 = vmul.f32 %v2013_v55, %v1969_v56  ;;  %v2019_v23 = vmul.f32 %v2018_v5, %v2014_v6 }
 0xe90   :  { %v1988_v39 = vsub.f32 1.5, %v1987_v30 }
 0xe91   :  { %v2022_v26 = vmul.f32 %v2018_v5, %v2017_v34  ;;  %v2024_v52 = vadd.f32 %v2023_v25, %v2019_v23 }
 0xe92   :  { %v1989_v45 = vmul.f32 %v2432_v31, %v1988_v39 }
 0xe93   :  { %v2027_v57 = vadd.f32 %v2023_v25, %v2022_v26 }
 0xe94   :  { %v1993_v47 = vsel %vm1992_vm4, %v2432_v31, %v1989_v45 }
 0xe95   :  { %2044 = vmatpush.msrb.mxu2 %v2027_v57  ;;  %v2015_v2 = vmul.f32 %v1993_v47, %v1967_v22 }
 0xe97   :  { %2045 = vmatpush.msrb.mxu2 %v2026_v40  ;;  %v2020_v49 = vmul.f32 %v2018_v5, %v2015_v2 }
 0xe99   :  { %v2025_v1 = vadd.f32 %v2023_v25, %v2020_v49 }
 0xe9b   :  { %2046 = vmatpush.msrb.mxu2 %v2025_v1 }
 0xe9d   :  { %2047 = vmatpush.msrb.mxu2 %v2024_v52 }
 0xe9e   :  { %2227 = vmatmul.msk.f32.vlgmr.msrb.gmra.mxu2 %vm137_vm1, %v2028_v32 }
 0xe9f   :  { %2072 = vmatpush.msra.mxu2 %v2055_v63 }
 0xea1   :  { %2073 = vmatpush.msra.mxu2 %v2054_v33 }
 0xea3   :  { %2074 = vmatpush.msra.mxu2 %v2053_v27 }
 0xea5   :  { %2075 = vmatpush.msra.mxu2 %v2052_v18 }
 0xf21   :  { %v2049_v41 = vpop.f32.mrf.mxu2 }
 0xf22   :  { %2228 = vmatmul.msk.f32.vlgmr.msra.gmra.mxu2 %vm137_vm1, %v2049_v41 }
 0xfa5   :  { %v2077_v7 = vpop.f32.mrf.mxu2 }
 0xfa6   :  { %v2078_v60 = vadd.f32 %v2077_v7, %v2056_v58 }
 0xfa8   :  { %2081 = vst.msk [vmem:[#allocation2] sm:$0x3] %vm2080_vm5, %v2078_v60 }
 0xfa9   :  { %2092 = dma.vmem_to_hbm [thread:$0]  %s2088_s8, 32, %s2090_s18, [#allocation3]  }
 0xfaa   :  { %2489 = dma.done.wait [#allocation3], 32  }
 0xfab   :  { %2490 = vsyncadd [#allocation3], 4294967264 }
 0xfac   :  { %2097 = vsyncpa [#allocation3], 1 }

</bundles_post_ra>
